<compile_context>
chip_gen: v7x
topology: tpu7x:2x2x1
jax: 0.10.0
libtpu: 0.0.40
codegen_flags: <defaults>
</compile_context>

<pallas_src>
import jax
import jax.numpy as jnp
from jax.experimental import pallas as pl
from jax.experimental.pallas import tpu as pltpu


# ------------------------------------------------------------------ Pallas kernels
def _conv_mm_bn_relu_kernel(x_ref, w_ref, scale_ref, shift_ref, o_ref):
    # x_ref: (TM, K) im2col patches; w_ref: (K, Cout); scale/shift: (1, Cout)
    acc = jnp.dot(x_ref[...], w_ref[...], preferred_element_type=jnp.float32)
    acc = acc * scale_ref[...] + shift_ref[...]          # folded BatchNorm (eval mode)
    o_ref[...] = jnp.maximum(acc, 0.0).astype(o_ref.dtype)  # ReLU


def _head_kernel(p_ref, x_ref, w_ref, b_ref, o_ref):
    # Global average pool expressed as a matmul: (N, N*HW) @ (N*HW, C) -> (N, C).
    pooled = jnp.dot(p_ref[...], x_ref[...], preferred_element_type=jnp.float32)
    # Flatten is implicit (pooled is already (N, C)); then the Linear classifier.
    logits = jnp.dot(pooled, w_ref[...], preferred_element_type=jnp.float32) + b_ref[...]
    o_ref[...] = logits.astype(o_ref.dtype)


# ------------------------------------------------------------------ wrappers
def _pick_tile_m(m, k, n, dtype_bytes=4, vmem_budget=8 * 1024 * 1024):
    """Largest M-tile (multiple of 8 dividing m, or full m) whose double-buffered
    in/out blocks + resident weight block fit a conservative VMEM budget."""
    def fits(tm):
        return (2 * (tm * k + tm * n) + k * n) * dtype_bytes <= vmem_budget

    if fits(m):
        return m
    for tm in (2048, 1024, 512, 256, 128, 64, 32, 16, 8):
        if m % tm == 0 and fits(tm):
            return tm
    return m


def _fused_conv_matmul(a, w2, scale, shift):
    m, k = a.shape
    _, n = w2.shape
    tm = _pick_tile_m(m, k, n, a.dtype.itemsize)
    return pl.pallas_call(
        _conv_mm_bn_relu_kernel,
        out_shape=jax.ShapeDtypeStruct((m, n), a.dtype),
        grid=(m // tm,),
        in_specs=[
            pl.BlockSpec((tm, k), lambda i: (i, 0)),
            pl.BlockSpec((k, n), lambda i: (0, 0)),
            pl.BlockSpec((1, n), lambda i: (0, 0)),
            pl.BlockSpec((1, n), lambda i: (0, 0)),
        ],
        out_specs=pl.BlockSpec((tm, n), lambda i: (i, 0)),
        compiler_params=pltpu.CompilerParams(dimension_semantics=("parallel",)),
    )(a, w2, scale, shift)


def conv_bn_relu(x_nhwc, w_oihw, scale, shift, *, stride, padding):
    """Conv2d (no bias) + folded BatchNorm + ReLU via im2col + fused Pallas matmul."""
    n, h, w, cin = x_nhwc.shape
    cout, _, k, _ = w_oihw.shape
    hs = (h + 2 * padding - k) // stride + 1
    ws = (w + 2 * padding - k) // stride + 1
    xp = jnp.pad(x_nhwc, ((0, 0), (padding, padding), (padding, padding), (0, 0)))
    patches = []
    for kh in range(k):
        for kw in range(k):
            patches.append(xp[:, kh:kh + stride * hs:stride, kw:kw + stride * ws:stride, :])
    cols = jnp.stack(patches, axis=3)                       # (N, Hs, Ws, k*k, Cin)
    a = cols.reshape(n * hs * ws, k * k * cin)              # lane-dense 2D operand
    w2 = jnp.transpose(w_oihw, (2, 3, 1, 0)).reshape(k * k * cin, cout)
    out = _fused_conv_matmul(a, w2, scale.reshape(1, cout), shift.reshape(1, cout))
    return out.reshape(n, hs, ws, cout)                     # NHWC


def pool_flatten_linear(x_nhwc, linear_w, linear_b):
    """AvgPool2d(spatial) + Flatten + Linear fused in one Pallas kernel."""
    n, h, w, c = x_nhwc.shape
    hw = h * w
    x2 = x_nhwc.reshape(n * hw, c)
    pool_mat = jnp.repeat(jnp.eye(n, dtype=x_nhwc.dtype), hw, axis=1) / float(hw)
    wt = linear_w.T                                         # (C, num_classes)
    b = linear_b.reshape(1, -1)
    num_classes = wt.shape[1]
    return pl.pallas_call(
        _head_kernel,
        out_shape=jax.ShapeDtypeStruct((n, num_classes), x_nhwc.dtype),
        grid=(1,),
        in_specs=[
            pl.BlockSpec((n, n * hw), lambda i: (0, 0)),
            pl.BlockSpec((n * hw, c), lambda i: (0, 0)),
            pl.BlockSpec((c, num_classes), lambda i: (0, 0)),
            pl.BlockSpec((1, num_classes), lambda i: (0, 0)),
        ],
        out_specs=pl.BlockSpec((n, num_classes), lambda i: (0, 0)),
    )(pool_mat, x2, wt, b)


def allcnn_forward(x_nchw, conv_params, layer_cfg, linear_w, linear_b):
    x = jnp.transpose(x_nchw, (0, 2, 3, 1))                 # NCHW -> NHWC (plumbing)
    for (w, scale, shift), (_, _, _, stride, padding) in zip(conv_params, layer_cfg):
        x = conv_bn_relu(x, w, scale, shift, stride=stride, padding=padding)
        # dropout1 / dropout2 are Identity (dropout=False default)
    return pool_flatten_linear(x, linear_w, linear_b)


# ------------------------------------------------------------------ pure-JAX reference
def ref_forward(x_nchw, conv_params, layer_cfg, linear_w, linear_b):
    out = x_nchw
    for (w, scale, shift), (_, _, _, stride, padding) in zip(conv_params, layer_cfg):
        out = jax.lax.conv_general_dilated(
            out, w, window_strides=(stride, stride),
            padding=[(padding, padding), (padding, padding)],
            dimension_numbers=("NCHW", "OIHW", "NCHW"),
            precision=jax.lax.Precision.HIGHEST)
        out = out * scale[None, :, None, None] + shift[None, :, None, None]
        out = jnp.maximum(out, 0.0)
    pooled = jnp.mean(out, axis=(2, 3))                     # AvgPool2d(8) == global mean
    return pooled @ linear_w.T + linear_b                   # Flatten + Linear


if __name__ == "__main__":
    key = jax.random.PRNGKey(0)
    fp = 0.25                                   # small model: n_filter1=24, n_filter2=48
    nf1, nf2 = int(96 * fp), int(192 * fp)
    num_classes = 10
    eps = 1e-5
    # (Cin, Cout, kernel, stride, padding) per Conv block, as in AllCNN.__init__
    layer_cfg = [
        (3,   nf1, 3, 1, 1),
        (nf1, nf1, 3, 1, 1),
        (nf1, nf2, 3, 2, 1),
        (nf2, nf2, 3, 1, 1),
        (nf2, nf2, 3, 1, 1),
        (nf2, nf2, 3, 2, 1),
        (nf2, nf2, 3, 1, 1),
        (nf2, nf2, 1, 1, 0),
    ]
    keys = jax.random.split(key, 4 * len(layer_cfg) + 3)
    conv_params = []
    ki = 0
    for (cin, cout, k, _, _) in layer_cfg:
        w = jax.random.normal(keys[ki], (cout, cin, k, k), jnp.float32) * (2.0 / (cin * k * k)) ** 0.5
        gamma = 1.0 + 0.1 * jax.random.normal(keys[ki + 1], (cout,), jnp.float32)
        beta = 0.1 * jax.random.normal(keys[ki + 2], (cout,), jnp.float32)
        running_mean = 0.1 * jax.random.normal(keys[ki + 3], (cout,), jnp.float32)
        running_var = jnp.ones((cout,), jnp.float32)
        scale = gamma / jnp.sqrt(running_var + eps)
        shift = beta - running_mean * scale
        conv_params.append((w, scale, shift))
        ki += 4
    linear_w = jax.random.normal(keys[ki], (num_classes, nf2), jnp.float32) * (1.0 / nf2) ** 0.5
    linear_b = 0.1 * jax.random.normal(keys[ki + 1], (num_classes,), jnp.float32)
    x = jax.random.normal(keys[ki + 2], (2, 3, 32, 32), jnp.float32)   # CIFAR-like NCHW

    y = allcnn_forward(x, conv_params, layer_cfg, linear_w, linear_b)
    y = jax.block_until_ready(y)

    ref = ref_forward(x, conv_params, layer_cfg, linear_w, linear_b)
    assert y.shape == (2, num_classes), y.shape
    err = float(jnp.max(jnp.abs(y - ref)) / (jnp.max(jnp.abs(ref)) + 1e-6))
    assert err < 5e-2, f"AllCNN Pallas forward mismatch vs reference: rel err {err}"
    print("KERNEL_OK")
</pallas_src>

<mosaic_0001>
module attributes {stable_mosaic.version = 11 : i64} {
  func.func @_conv_mm_bn_relu_kernel(%arg0: i32, %arg1: memref<2048x27xf32, #tpu.memory_space<vmem>>, %arg2: memref<27x24xf32, #tpu.memory_space<vmem>>, %arg3: memref<1x24xf32, #tpu.memory_space<vmem>>, %arg4: memref<1x24xf32, #tpu.memory_space<vmem>>, %arg5: memref<2048x24xf32, #tpu.memory_space<vmem>>) attributes {dimension_semantics = [#tpu.dimension_semantics<parallel>], iteration_bounds = array<i64: 1>, scalar_prefetch = 0 : i64, scratch_operands = 0 : i64, tpu.core_type = #tpu.core_type<tc>, window_params = [{transform_indices = @transform_0, window_bounds = array<i64: 2048, 27>}, {pipeline_mode = #tpu.pipeline_mode<synchronous>, transform_indices = @transform_1, window_bounds = array<i64: 27, 24>}, {pipeline_mode = #tpu.pipeline_mode<synchronous>, transform_indices = @transform_2, window_bounds = array<i64: 1, 24>}, {pipeline_mode = #tpu.pipeline_mode<synchronous>, transform_indices = @transform_3, window_bounds = array<i64: 1, 24>}, {transform_indices = @transform_4, window_bounds = array<i64: 2048, 24>}]} {
    %c0 = arith.constant 0 : index
    %c0_0 = arith.constant 0 : index
    %0 = vector.load %arg1[%c0, %c0_0] : memref<2048x27xf32, #tpu.memory_space<vmem>>, vector<2048x27xf32>
    %c0_1 = arith.constant 0 : index
    %c0_2 = arith.constant 0 : index
    %1 = vector.load %arg2[%c0_1, %c0_2] : memref<27x24xf32, #tpu.memory_space<vmem>>, vector<27x24xf32>
    %cst = arith.constant dense<0.000000e+00> : vector<2048x24xf32>
    %2 = tpu.matmul %0, %1, %cst {dimension_numbers = #tpu.dot_dimension_numbers<[1], [0], [0], [1], [0, 0, 1, 1], [], []>} : vector<2048x27xf32>, vector<27x24xf32>, vector<2048x24xf32> -> vector<2048x24xf32>
    %c0_3 = arith.constant 0 : index
    %c0_4 = arith.constant 0 : index
    %3 = vector.load %arg3[%c0_3, %c0_4] : memref<1x24xf32, #tpu.memory_space<vmem>>, vector<1x24xf32>
    %4 = vector.broadcast %3 : vector<1x24xf32> to vector<2048x24xf32>
    %5 = arith.mulf %2, %4 : vector<2048x24xf32>
    %c0_5 = arith.constant 0 : index
    %c0_6 = arith.constant 0 : index
    %6 = vector.load %arg4[%c0_5, %c0_6] : memref<1x24xf32, #tpu.memory_space<vmem>>, vector<1x24xf32>
    %7 = vector.broadcast %6 : vector<1x24xf32> to vector<2048x24xf32>
    %8 = arith.addf %5, %7 : vector<2048x24xf32>
    %cst_7 = arith.constant 0.000000e+00 : f32
    %9 = vector.broadcast %cst_7 : f32 to vector<2048x24xf32>
    %10 = arith.maximumf %8, %9 : vector<2048x24xf32>
    %c0_8 = arith.constant 0 : index
    %c0_9 = arith.constant 0 : index
    %11 = vector.load %arg5[%c0_8, %c0_9] : memref<2048x24xf32, #tpu.memory_space<vmem>>, vector<2048x24xf32>
    tpu.vector_store %arg5[%c0_8, %c0_9], %10 {strides = array<i32>} : memref<2048x24xf32, #tpu.memory_space<vmem>>, vector<2048x24xf32>,
    return
  }
  func.func @transform_0(%arg0: i32) -> (i32, i32) {
    %c0_i32 = arith.constant 0 : i32
    %c0_i32_0 = arith.constant 0 : i32
    return %arg0, %c0_i32 : i32, i32
  }
  func.func @transform_1(%arg0: i32) -> (i32, i32) {
    %c0_i32 = arith.constant 0 : i32
    %c0_i32_0 = arith.constant 0 : i32
    %c0_i32_1 = arith.constant 0 : i32
    return %c0_i32, %c0_i32_0 : i32, i32
  }
  func.func @transform_2(%arg0: i32) -> (i32, i32) {
    %c0_i32 = arith.constant 0 : i32
    %c0_i32_0 = arith.constant 0 : i32
    %c0_i32_1 = arith.constant 0 : i32
    return %c0_i32, %c0_i32_0 : i32, i32
  }
  func.func @transform_3(%arg0: i32) -> (i32, i32) {
    %c0_i32 = arith.constant 0 : i32
    %c0_i32_0 = arith.constant 0 : i32
    %c0_i32_1 = arith.constant 0 : i32
    return %c0_i32, %c0_i32_0 : i32, i32
  }
  func.func @transform_4(%arg0: i32) -> (i32, i32) {
    %c0_i32 = arith.constant 0 : i32
    %c0_i32_0 = arith.constant 0 : i32
    return %arg0, %c0_i32 : i32, i32
  }
}

</mosaic_0001>

<bundles_post_ra>
// kernel: tpu_custom_call.1
= control target key start
LH: loop header
LB: loop body
LE: loop exit
PB: predicated region body
PF: predicated region fallthrough
CT: control target
= control target key end

     0   :  { %vm1046_vm0 = vcmask 1042432   ;;  %vm277_vm1 = vcmask 220160   ;;  %vm4368_vm2 = vmmov 1   ;;  %vm3177_vm4 = vcmask 195584   ;;  %s6996_s1 = inlined_call_operand.vmem [shape: f32[27,24], index: 1, kind: input, shape index: {}]   ;;  %s6997_s0 = inlined_call_operand.vmem [shape: f32[2048,27], index: 0, kind: input, shape index: {}]   ;;  %s6998_s2 = inlined_call_operand.vmem [shape: f32[1,24], index: 2, kind: input, shape index: {}]   ;;  %s6999_s3 = inlined_call_operand.vmem [shape: f32[1,24], index: 3, kind: input, shape index: {}]   ;;  %s7000_s4 = inlined_call_operand.vmem [shape: f32[2048,24], index: 4, kind: output, shape index: {}]  }
   0x1   :  { %v273_v0 = vld [vmem:[%s6996_s1] sm:$0xff]  ;;  %v274_v1 = vld [vmem:[%s6996_s1 + $0x8] sm:$0xff]  ;;  %v275_v2 = vld [vmem:[%s6996_s1 + $0x10] sm:$0xff] }
   0x2   :  { %v4349_v3 = vpack.c.bf16 %v274_v1, %v273_v0  ;;  %v276_v4 = vld [vmem:[%s6996_s1 + $0x18] sm:$0x7]  ;;  %v17_v5 = vld [vmem:[%s6997_s0] sm:$0xff]  ;;  %vm4354_vm3 = vmpackc.low %vm1046_vm0, %vm4368_vm2 }
   0x3   :  { %v4353_v6 = vpack.c.bf16 %v276_v4, %v275_v2  ;;  %3965 = vmatprep.mubr.msk.f32.mxu0 %vm277_vm1, %v17_v5  ;;  %v145_v7 = vld [vmem:[%s6997_s0 + $0x400] sm:$0xff]  ;;  %v18_v8 = vld [vmem:[%s6997_s0 + $0x8] sm:$0xff]  ;;  %v19_v10 = vld [vmem:[%s6997_s0 + $0x10] sm:$0xff] }
   0x4   :  { %4350 = vmatprep.subr.bf16.mxu0 %v4349_v3  ;;  %4359 = vmatprep.subr.bf16.mxu1 %v4349_v3  ;;  %v146_v9 = vld [vmem:[%s6997_s0 + $0x408] sm:$0xff]  ;;  %v147_v11 = vld [vmem:[%s6997_s0 + $0x410] sm:$0xff]  ;;  %v20_v12 = vld [vmem:[%s6997_s0 + $0x18] sm:$0xff] }
   0x5   :  { %4352 = vmatpush3.bf16.msra.mxu0 %v4349_v3  ;;  %4361 = vmatpush3.bf16.msra.mxu1 %v4349_v3  ;;  %v148_v13 = vld [vmem:[%s6997_s0 + $0x418] sm:$0xff]  ;;  %v21_v14 = vld [vmem:[%s6997_s0 + $0x20] sm:$0xff]  ;;  %v22_v16 = vld [vmem:[%s6997_s0 + $0x28] sm:$0xff] }
   0x6   :  { %4355 = vmatprep.subr.msk.bf16.mxu0 %vm4354_vm3, %v4353_v6  ;;  %4360 = vmatprep.subr.msk.bf16.mxu1 %vm4354_vm3, %v4353_v6  ;;  %v149_v15 = vld [vmem:[%s6997_s0 + $0x420] sm:$0xff]  ;;  %v150_v17 = vld [vmem:[%s6997_s0 + $0x428] sm:$0xff]  ;;  %v23_v18 = vld [vmem:[%s6997_s0 + $0x30] sm:$0xff] }
   0x7   :  { %4157 = vmatprep.mubr.msk.f32.mxu1 %vm277_vm1, %v145_v7  ;;  %v151_v19 = vld [vmem:[%s6997_s0 + $0x430] sm:$0xff]  ;;  %v24_v20 = vld [vmem:[%s6997_s0 + $0x38] sm:$0xff]  ;;  %v25_v22 = vld [vmem:[%s6997_s0 + $0x40] sm:$0xff] }
   0x8   :  { %v152_v21 = vld [vmem:[%s6997_s0 + $0x438] sm:$0xff]  ;;  %v153_v23 = vld [vmem:[%s6997_s0 + $0x440] sm:$0xff]  ;;  %v26_v24 = vld [vmem:[%s6997_s0 + $0x48] sm:$0xff] }
   0x9   :  { %4358 = vmatpush3.bf16.msk.msra.mxu0 %vm4354_vm3, %v4353_v6  ;;  %4362 = vmatpush3.bf16.msk.msra.mxu1 %vm4354_vm3, %v4353_v6  ;;  %v154_v25 = vld [vmem:[%s6997_s0 + $0x448] sm:$0xff]  ;;  %v27_v26 = vld [vmem:[%s6997_s0 + $0x50] sm:$0xff]  ;;  %v28_v28 = vld [vmem:[%s6997_s0 + $0x58] sm:$0xff] }
   0xa   :  { %v155_v27 = vld [vmem:[%s6997_s0 + $0x450] sm:$0xff]  ;;  %v156_v29 = vld [vmem:[%s6997_s0 + $0x458] sm:$0xff]  ;;  %v29_v30 = vld [vmem:[%s6997_s0 + $0x60] sm:$0xff] }
   0xb   :  { %v157_v31 = vld [vmem:[%s6997_s0 + $0x460] sm:$0xff]  ;;  %v30_v32 = vld [vmem:[%s6997_s0 + $0x68] sm:$0xff]  ;;  %v31_v34 = vld [vmem:[%s6997_s0 + $0x70] sm:$0xff] }
   0xc   :  { %3966 = vmatmul.mubr.msk.f32.vlgmr.msra.gmra.mrb[0].mxu0 %vm277_vm1, %v18_v8  ;;  %4158 = vmatmul.mubr.msk.f32.vlgmr.msra.gmra.mrb[0].mxu1 %vm277_vm1, %v146_v9  ;;  %v158_v33 = vld [vmem:[%s6997_s0 + $0x468] sm:$0xff]  ;;  %v159_v35 = vld [vmem:[%s6997_s0 + $0x470] sm:$0xff]  ;;  %v32_v36 = vld [vmem:[%s6997_s0 + $0x78] sm:$0xff] }
   0xd   :  { %3968 = vmatprep.mubr.msk.f32.mxu0 %vm277_vm1, %v19_v10  ;;  %4160 = vmatprep.mubr.msk.f32.mxu1 %vm277_vm1, %v147_v11  ;;  %v160_v37 = vld [vmem:[%s6997_s0 + $0x478] sm:$0xff]  ;;  %v33_v38 = vld [vmem:[%s6997_s0 + $0x80] sm:$0xff]  ;;  %v34_v40 = vld [vmem:[%s6997_s0 + $0x88] sm:$0xff] }
   0xe   :  { %v161_v39 = vld [vmem:[%s6997_s0 + $0x480] sm:$0xff]  ;;  %v162_v41 = vld [vmem:[%s6997_s0 + $0x488] sm:$0xff]  ;;  %v35_v42 = vld [vmem:[%s6997_s0 + $0x90] sm:$0xff] }
   0xf   :  { %v163_v43 = vld [vmem:[%s6997_s0 + $0x490] sm:$0xff]  ;;  %v36_v44 = vld [vmem:[%s6997_s0 + $0x98] sm:$0xff]  ;;  %v37_v46 = vld [vmem:[%s6997_s0 + $0xa0] sm:$0xff] }
  0x10   :  { %3969 = vmatmul.mubr.msk.f32.gmra.mrb[2].mxu0 %vm277_vm1, %v20_v12  ;;  %4161 = vmatmul.mubr.msk.f32.gmra.mrb[2].mxu1 %vm277_vm1, %v148_v13  ;;  %v164_v45 = vld [vmem:[%s6997_s0 + $0x498] sm:$0xff]  ;;  %v165_v47 = vld [vmem:[%s6997_s0 + $0x4a0] sm:$0xff]  ;;  %v38_v48 = vld [vmem:[%s6997_s0 + $0xa8] sm:$0xff] }
  0x11   :  { %3971 = vmatprep.mubr.msk.f32.mxu0 %vm277_vm1, %v21_v14  ;;  %4163 = vmatprep.mubr.msk.f32.mxu1 %vm277_vm1, %v149_v15  ;;  %v166_v49 = vld [vmem:[%s6997_s0 + $0x4a8] sm:$0xff]  ;;  %v39_v50 = vld [vmem:[%s6997_s0 + $0xb0] sm:$0xff]  ;;  %v40_v52 = vld [vmem:[%s6997_s0 + $0xb8] sm:$0xff] }
  0x12   :  { %v167_v51 = vld [vmem:[%s6997_s0 + $0x4b0] sm:$0xff]  ;;  %v168_v53 = vld [vmem:[%s6997_s0 + $0x4b8] sm:$0xff]  ;;  %v41_v54 = vld [vmem:[%s6997_s0 + $0xc0] sm:$0xff] }
  0x13   :  { %v169_v55 = vld [vmem:[%s6997_s0 + $0x4c0] sm:$0xff]  ;;  %v42_v56 = vld [vmem:[%s6997_s0 + $0xc8] sm:$0xff]  ;;  %v43_v58 = vld [vmem:[%s6997_s0 + $0xd0] sm:$0xff] }
  0x14   :  { %3972 = vmatmul.mubr.msk.f32.gmra.mrb[4].mxu0 %vm277_vm1, %v22_v16  ;;  %4164 = vmatmul.mubr.msk.f32.gmra.mrb[4].mxu1 %vm277_vm1, %v150_v17  ;;  %v170_v57 = vld [vmem:[%s6997_s0 + $0x4c8] sm:$0xff]  ;;  %v171_v59 = vld [vmem:[%s6997_s0 + $0x4d0] sm:$0xff]  ;;  %v44_v60 = vld [vmem:[%s6997_s0 + $0xd8] sm:$0xff] }
  0x15   :  { %3974 = vmatprep.mubr.msk.f32.mxu0 %vm277_vm1, %v23_v18  ;;  %4166 = vmatprep.mubr.msk.f32.mxu1 %vm277_vm1, %v151_v19  ;;  %v172_v61 = vld [vmem:[%s6997_s0 + $0x4d8] sm:$0xff]  ;;  %v45_v62 = vld [vmem:[%s6997_s0 + $0xe0] sm:$0xff]  ;;  %v46_v0 = vld [vmem:[%s6997_s0 + $0xe8] sm:$0xff] }
  0x16   :  { %v173_v63 = vld [vmem:[%s6997_s0 + $0x4e0] sm:$0xff]  ;;  %v174_v1 = vld [vmem:[%s6997_s0 + $0x4e8] sm:$0xff]  ;;  %v47_v2 = vld [vmem:[%s6997_s0 + $0xf0] sm:$0xff] }
  0x17   :  { %v175_v3 = vld [vmem:[%s6997_s0 + $0x4f0] sm:$0xff]  ;;  %v48_v4 = vld [vmem:[%s6997_s0 + $0xf8] sm:$0xff]  ;;  %v49_v6 = vld [vmem:[%s6997_s0 + $0x100] sm:$0xff] }
  0x18   :  { %3975 = vmatmul.mubr.msk.f32.gmra.mrb[6].mxu0 %vm277_vm1, %v24_v20  ;;  %4167 = vmatmul.mubr.msk.f32.gmra.mrb[6].mxu1 %vm277_vm1, %v152_v21  ;;  %v176_v5 = vld [vmem:[%s6997_s0 + $0x4f8] sm:$0xff]  ;;  %v177_v7 = vld [vmem:[%s6997_s0 + $0x500] sm:$0xff]  ;;  %v50_v8 = vld [vmem:[%s6997_s0 + $0x108] sm:$0xff] }
  0x19   :  { %3977 = vmatprep.mubr.msk.f32.mxu0 %vm277_vm1, %v25_v22  ;;  %4169 = vmatprep.mubr.msk.f32.mxu1 %vm277_vm1, %v153_v23  ;;  %v178_v9 = vld [vmem:[%s6997_s0 + $0x508] sm:$0xff]  ;;  %v51_v10 = vld [vmem:[%s6997_s0 + $0x110] sm:$0xff]  ;;  %v52_v12 = vld [vmem:[%s6997_s0 + $0x118] sm:$0xff] }
  0x1a   :  { %v179_v11 = vld [vmem:[%s6997_s0 + $0x510] sm:$0xff]  ;;  %v180_v13 = vld [vmem:[%s6997_s0 + $0x518] sm:$0xff]  ;;  %v53_v14 = vld [vmem:[%s6997_s0 + $0x120] sm:$0xff] }
  0x1b   :  { %v181_v15 = vld [vmem:[%s6997_s0 + $0x520] sm:$0xff]  ;;  %v54_v16 = vld [vmem:[%s6997_s0 + $0x128] sm:$0xff]  ;;  %v55_v18 = vld [vmem:[%s6997_s0 + $0x130] sm:$0xff] }
  0x1c   :  { %3978 = vmatmul.mubr.msk.f32.gmra.mrb[8].mxu0 %vm277_vm1, %v26_v24  ;;  %4170 = vmatmul.mubr.msk.f32.gmra.mrb[8].mxu1 %vm277_vm1, %v154_v25  ;;  %v182_v17 = vld [vmem:[%s6997_s0 + $0x528] sm:$0xff]  ;;  %v183_v19 = vld [vmem:[%s6997_s0 + $0x530] sm:$0xff]  ;;  %v56_v20 = vld [vmem:[%s6997_s0 + $0x138] sm:$0xff] }
  0x1d   :  { %3980 = vmatprep.mubr.msk.f32.mxu0 %vm277_vm1, %v27_v26  ;;  %4172 = vmatprep.mubr.msk.f32.mxu1 %vm277_vm1, %v155_v27  ;;  %v184_v21 = vld [vmem:[%s6997_s0 + $0x538] sm:$0xff]  ;;  %v57_v22 = vld [vmem:[%s6997_s0 + $0x140] sm:$0xff]  ;;  %v58_v24 = vld [vmem:[%s6997_s0 + $0x148] sm:$0xff] }
  0x1e   :  { %v185_v23 = vld [vmem:[%s6997_s0 + $0x540] sm:$0xff]  ;;  %v186_v25 = vld [vmem:[%s6997_s0 + $0x548] sm:$0xff]  ;;  %v59_v26 = vld [vmem:[%s6997_s0 + $0x150] sm:$0xff] }
  0x1f   :  { %v187_v27 = vld [vmem:[%s6997_s0 + $0x550] sm:$0xff] }
  0x20   :  { %3981 = vmatmul.mubr.msk.f32.gmra.mrb[10].mxu0 %vm277_vm1, %v28_v28  ;;  %4173 = vmatmul.mubr.msk.f32.gmra.mrb[10].mxu1 %vm277_vm1, %v156_v29  ;;  %v60_v28 = vld [vmem:[%s6997_s0 + $0x158] sm:$0xff] }
  0x21   :  { %3983 = vmatprep.mubr.msk.f32.mxu0 %vm277_vm1, %v29_v30  ;;  %4175 = vmatprep.mubr.msk.f32.mxu1 %vm277_vm1, %v157_v31  ;;  %v188_v29 = vld [vmem:[%s6997_s0 + $0x558] sm:$0xff]  ;;  %v61_v30 = vld [vmem:[%s6997_s0 + $0x160] sm:$0xff] }
  0x22   :  { %v189_v31 = vld [vmem:[%s6997_s0 + $0x560] sm:$0xff] }
  0x24   :  { %3984 = vmatmul.mubr.msk.f32.gmra.mrb[12].mxu0 %vm277_vm1, %v30_v32  ;;  %4176 = vmatmul.mubr.msk.f32.gmra.mrb[12].mxu1 %vm277_vm1, %v158_v33  ;;  %v62_v32 = vld [vmem:[%s6997_s0 + $0x168] sm:$0xff] }
  0x25   :  { %3986 = vmatprep.mubr.msk.f32.mxu0 %vm277_vm1, %v31_v34  ;;  %4178 = vmatprep.mubr.msk.f32.mxu1 %vm277_vm1, %v159_v35  ;;  %v190_v33 = vld [vmem:[%s6997_s0 + $0x568] sm:$0xff]  ;;  %v63_v34 = vld [vmem:[%s6997_s0 + $0x170] sm:$0xff] }
  0x26   :  { %v191_v35 = vld [vmem:[%s6997_s0 + $0x570] sm:$0xff] }
  0x28   :  { %3987 = vmatmul.mubr.msk.f32.gmra.mrb[14].mxu0 %vm277_vm1, %v32_v36  ;;  %4179 = vmatmul.mubr.msk.f32.gmra.mrb[14].mxu1 %vm277_vm1, %v160_v37  ;;  %v64_v36 = vld [vmem:[%s6997_s0 + $0x178] sm:$0xff] }
  0x29   :  { %3989 = vmatprep.mubr.msk.f32.mxu0 %vm277_vm1, %v33_v38  ;;  %4181 = vmatprep.mubr.msk.f32.mxu1 %vm277_vm1, %v161_v39  ;;  %v192_v37 = vld [vmem:[%s6997_s0 + $0x578] sm:$0xff]  ;;  %v65_v38 = vld [vmem:[%s6997_s0 + $0x180] sm:$0xff] }
  0x2a   :  { %v193_v39 = vld [vmem:[%s6997_s0 + $0x580] sm:$0xff] }
  0x2c   :  { %3990 = vmatmul.mubr.msk.f32.gmra.mrb[16].mxu0 %vm277_vm1, %v34_v40  ;;  %4182 = vmatmul.mubr.msk.f32.gmra.mrb[16].mxu1 %vm277_vm1, %v162_v41  ;;  %v66_v40 = vld [vmem:[%s6997_s0 + $0x188] sm:$0xff] }
  0x2d   :  { %3992 = vmatprep.mubr.msk.f32.mxu0 %vm277_vm1, %v35_v42  ;;  %4184 = vmatprep.mubr.msk.f32.mxu1 %vm277_vm1, %v163_v43  ;;  %v194_v41 = vld [vmem:[%s6997_s0 + $0x588] sm:$0xff]  ;;  %v67_v42 = vld [vmem:[%s6997_s0 + $0x190] sm:$0xff] }
  0x2e   :  { %v195_v43 = vld [vmem:[%s6997_s0 + $0x590] sm:$0xff] }
  0x30   :  { %3993 = vmatmul.mubr.msk.f32.gmra.mrb[18].mxu0 %vm277_vm1, %v36_v44  ;;  %4185 = vmatmul.mubr.msk.f32.gmra.mrb[18].mxu1 %vm277_vm1, %v164_v45  ;;  %v68_v44 = vld [vmem:[%s6997_s0 + $0x198] sm:$0xff] }
  0x31   :  { %3995 = vmatprep.mubr.msk.f32.mxu0 %vm277_vm1, %v37_v46  ;;  %4187 = vmatprep.mubr.msk.f32.mxu1 %vm277_vm1, %v165_v47  ;;  %v196_v45 = vld [vmem:[%s6997_s0 + $0x598] sm:$0xff]  ;;  %v69_v46 = vld [vmem:[%s6997_s0 + $0x1a0] sm:$0xff] }
  0x32   :  { %v197_v47 = vld [vmem:[%s6997_s0 + $0x5a0] sm:$0xff] }
  0x34   :  { %3996 = vmatmul.mubr.msk.f32.gmra.mrb[20].mxu0 %vm277_vm1, %v38_v48  ;;  %4188 = vmatmul.mubr.msk.f32.gmra.mrb[20].mxu1 %vm277_vm1, %v166_v49  ;;  %v70_v48 = vld [vmem:[%s6997_s0 + $0x1a8] sm:$0xff] }
  0x35   :  { %3998 = vmatprep.mubr.msk.f32.mxu0 %vm277_vm1, %v39_v50  ;;  %4190 = vmatprep.mubr.msk.f32.mxu1 %vm277_vm1, %v167_v51  ;;  %v198_v49 = vld [vmem:[%s6997_s0 + $0x5a8] sm:$0xff]  ;;  %v71_v50 = vld [vmem:[%s6997_s0 + $0x1b0] sm:$0xff] }
  0x36   :  { %v199_v51 = vld [vmem:[%s6997_s0 + $0x5b0] sm:$0xff] }
  0x38   :  { %3999 = vmatmul.mubr.msk.f32.gmra.mrb[22].mxu0 %vm277_vm1, %v40_v52  ;;  %4191 = vmatmul.mubr.msk.f32.gmra.mrb[22].mxu1 %vm277_vm1, %v168_v53  ;;  %v72_v52 = vld [vmem:[%s6997_s0 + $0x1b8] sm:$0xff] }
  0x39   :  { %4001 = vmatprep.mubr.msk.f32.mxu0 %vm277_vm1, %v41_v54  ;;  %4193 = vmatprep.mubr.msk.f32.mxu1 %vm277_vm1, %v169_v55  ;;  %v200_v53 = vld [vmem:[%s6997_s0 + $0x5b8] sm:$0xff]  ;;  %v73_v54 = vld [vmem:[%s6997_s0 + $0x1c0] sm:$0xff] }
  0x3a   :  { %v201_v55 = vld [vmem:[%s6997_s0 + $0x5c0] sm:$0xff] }
  0x3c   :  { %4002 = vmatmul.mubr.msk.f32.gmra.mrb[24].mxu0 %vm277_vm1, %v42_v56  ;;  %4194 = vmatmul.mubr.msk.f32.gmra.mrb[24].mxu1 %vm277_vm1, %v170_v57  ;;  %v74_v56 = vld [vmem:[%s6997_s0 + $0x1c8] sm:$0xff] }
  0x3d   :  { %4004 = vmatprep.mubr.msk.f32.mxu0 %vm277_vm1, %v43_v58  ;;  %4196 = vmatprep.mubr.msk.f32.mxu1 %vm277_vm1, %v171_v59  ;;  %v202_v57 = vld [vmem:[%s6997_s0 + $0x5c8] sm:$0xff]  ;;  %v75_v58 = vld [vmem:[%s6997_s0 + $0x1d0] sm:$0xff] }
  0x3e   :  { %v203_v59 = vld [vmem:[%s6997_s0 + $0x5d0] sm:$0xff] }
  0x40   :  { %4005 = vmatmul.mubr.msk.f32.gmra.mrb[26].mxu0 %vm277_vm1, %v44_v60  ;;  %4197 = vmatmul.mubr.msk.f32.gmra.mrb[26].mxu1 %vm277_vm1, %v172_v61  ;;  %v76_v60 = vld [vmem:[%s6997_s0 + $0x1d8] sm:$0xff] }
  0x41   :  { %4007 = vmatprep.mubr.msk.f32.mxu0 %vm277_vm1, %v45_v62  ;;  %4199 = vmatprep.mubr.msk.f32.mxu1 %vm277_vm1, %v173_v63  ;;  %v204_v61 = vld [vmem:[%s6997_s0 + $0x5d8] sm:$0xff]  ;;  %v77_v62 = vld [vmem:[%s6997_s0 + $0x1e0] sm:$0xff] }
  0x42   :  { %v205_v63 = vld [vmem:[%s6997_s0 + $0x5e0] sm:$0xff] }
  0x44   :  { %4008 = vmatmul.mubr.msk.f32.gmra.mrb[28].mxu0 %vm277_vm1, %v46_v0  ;;  %4200 = vmatmul.mubr.msk.f32.gmra.mrb[28].mxu1 %vm277_vm1, %v174_v1  ;;  %v78_v0 = vld [vmem:[%s6997_s0 + $0x1e8] sm:$0xff] }
  0x45   :  { %4010 = vmatprep.mubr.msk.f32.mxu0 %vm277_vm1, %v47_v2  ;;  %4202 = vmatprep.mubr.msk.f32.mxu1 %vm277_vm1, %v175_v3  ;;  %v206_v1 = vld [vmem:[%s6997_s0 + $0x5e8] sm:$0xff]  ;;  %v79_v2 = vld [vmem:[%s6997_s0 + $0x1f0] sm:$0xff] }
  0x46   :  { %v207_v3 = vld [vmem:[%s6997_s0 + $0x5f0] sm:$0xff] }
  0x48   :  { %4011 = vmatmul.mubr.msk.f32.gmra.mrb[30].mxu0 %vm277_vm1, %v48_v4  ;;  %4203 = vmatmul.mubr.msk.f32.gmra.mrb[30].mxu1 %vm277_vm1, %v176_v5  ;;  %v80_v4 = vld [vmem:[%s6997_s0 + $0x1f8] sm:$0xff] }
  0x49   :  { %4013 = vmatprep.mubr.msk.f32.mxu0 %vm277_vm1, %v49_v6  ;;  %4205 = vmatprep.mubr.msk.f32.mxu1 %vm277_vm1, %v177_v7  ;;  %v208_v5 = vld [vmem:[%s6997_s0 + $0x5f8] sm:$0xff]  ;;  %v81_v6 = vld [vmem:[%s6997_s0 + $0x200] sm:$0xff] }
  0x4a   :  { %v209_v7 = vld [vmem:[%s6997_s0 + $0x600] sm:$0xff] }
  0x4c   :  { %4014 = vmatmul.mubr.msk.f32.gmra.mrb[32].mxu0 %vm277_vm1, %v50_v8  ;;  %4206 = vmatmul.mubr.msk.f32.gmra.mrb[32].mxu1 %vm277_vm1, %v178_v9  ;;  %v82_v8 = vld [vmem:[%s6997_s0 + $0x208] sm:$0xff] }
  0x4d   :  { %4016 = vmatprep.mubr.msk.f32.mxu0 %vm277_vm1, %v51_v10  ;;  %4208 = vmatprep.mubr.msk.f32.mxu1 %vm277_vm1, %v179_v11  ;;  %v210_v9 = vld [vmem:[%s6997_s0 + $0x608] sm:$0xff]  ;;  %v83_v10 = vld [vmem:[%s6997_s0 + $0x210] sm:$0xff] }
  0x4e   :  { %v211_v11 = vld [vmem:[%s6997_s0 + $0x610] sm:$0xff] }
  0x50   :  { %4017 = vmatmul.mubr.msk.f32.gmra.mrb[34].mxu0 %vm277_vm1, %v52_v12  ;;  %4209 = vmatmul.mubr.msk.f32.gmra.mrb[34].mxu1 %vm277_vm1, %v180_v13  ;;  %v84_v12 = vld [vmem:[%s6997_s0 + $0x218] sm:$0xff] }
  0x51   :  { %4019 = vmatprep.mubr.msk.f32.mxu0 %vm277_vm1, %v53_v14  ;;  %4211 = vmatprep.mubr.msk.f32.mxu1 %vm277_vm1, %v181_v15  ;;  %v212_v13 = vld [vmem:[%s6997_s0 + $0x618] sm:$0xff]  ;;  %v85_v14 = vld [vmem:[%s6997_s0 + $0x220] sm:$0xff] }
  0x52   :  { %v213_v15 = vld [vmem:[%s6997_s0 + $0x620] sm:$0xff] }
  0x54   :  { %4020 = vmatmul.mubr.msk.f32.gmra.mrb[36].mxu0 %vm277_vm1, %v54_v16  ;;  %4212 = vmatmul.mubr.msk.f32.gmra.mrb[36].mxu1 %vm277_vm1, %v182_v17  ;;  %v86_v16 = vld [vmem:[%s6997_s0 + $0x228] sm:$0xff] }
  0x55   :  { %4022 = vmatprep.mubr.msk.f32.mxu0 %vm277_vm1, %v55_v18  ;;  %4214 = vmatprep.mubr.msk.f32.mxu1 %vm277_vm1, %v183_v19  ;;  %v214_v17 = vld [vmem:[%s6997_s0 + $0x628] sm:$0xff]  ;;  %v87_v18 = vld [vmem:[%s6997_s0 + $0x230] sm:$0xff] }
  0x56   :  { %v215_v19 = vld [vmem:[%s6997_s0 + $0x630] sm:$0xff] }
  0x58   :  { %4023 = vmatmul.mubr.msk.f32.gmra.mrb[38].mxu0 %vm277_vm1, %v56_v20  ;;  %4215 = vmatmul.mubr.msk.f32.gmra.mrb[38].mxu1 %vm277_vm1, %v184_v21  ;;  %v88_v20 = vld [vmem:[%s6997_s0 + $0x238] sm:$0xff] }
  0x59   :  { %4025 = vmatprep.mubr.msk.f32.mxu0 %vm277_vm1, %v57_v22  ;;  %4217 = vmatprep.mubr.msk.f32.mxu1 %vm277_vm1, %v185_v23  ;;  %v216_v21 = vld [vmem:[%s6997_s0 + $0x638] sm:$0xff]  ;;  %v89_v22 = vld [vmem:[%s6997_s0 + $0x240] sm:$0xff] }
  0x5a   :  { %v217_v23 = vld [vmem:[%s6997_s0 + $0x640] sm:$0xff] }
  0x5c   :  { %4026 = vmatmul.mubr.msk.f32.gmra.mrb[40].mxu0 %vm277_vm1, %v58_v24  ;;  %4218 = vmatmul.mubr.msk.f32.gmra.mrb[40].mxu1 %vm277_vm1, %v186_v25  ;;  %v90_v24 = vld [vmem:[%s6997_s0 + $0x248] sm:$0xff] }
  0x5d   :  { %4028 = vmatprep.mubr.msk.f32.mxu0 %vm277_vm1, %v59_v26  ;;  %4220 = vmatprep.mubr.msk.f32.mxu1 %vm277_vm1, %v187_v27  ;;  %v218_v25 = vld [vmem:[%s6997_s0 + $0x648] sm:$0xff]  ;;  %v91_v26 = vld [vmem:[%s6997_s0 + $0x250] sm:$0xff] }
  0x5e   :  { %v219_v27 = vld [vmem:[%s6997_s0 + $0x650] sm:$0xff] }
  0x60   :  { %4029 = vmatmul.mubr.msk.f32.gmra.mrb[42].mxu0 %vm277_vm1, %v60_v28  ;;  %4221 = vmatmul.mubr.msk.f32.gmra.mrb[42].mxu1 %vm277_vm1, %v188_v29  ;;  %v92_v28 = vld [vmem:[%s6997_s0 + $0x258] sm:$0xff] }
  0x61   :  { %4031 = vmatprep.mubr.msk.f32.mxu0 %vm277_vm1, %v61_v30  ;;  %4223 = vmatprep.mubr.msk.f32.mxu1 %vm277_vm1, %v189_v31  ;;  %v220_v29 = vld [vmem:[%s6997_s0 + $0x658] sm:$0xff]  ;;  %v93_v30 = vld [vmem:[%s6997_s0 + $0x260] sm:$0xff] }
  0x62   :  { %v221_v31 = vld [vmem:[%s6997_s0 + $0x660] sm:$0xff] }
  0x64   :  { %4032 = vmatmul.mubr.msk.f32.gmra.mrb[44].mxu0 %vm277_vm1, %v62_v32  ;;  %4224 = vmatmul.mubr.msk.f32.gmra.mrb[44].mxu1 %vm277_vm1, %v190_v33  ;;  %v94_v32 = vld [vmem:[%s6997_s0 + $0x268] sm:$0xff] }
  0x65   :  { %4034 = vmatprep.mubr.msk.f32.mxu0 %vm277_vm1, %v63_v34  ;;  %4226 = vmatprep.mubr.msk.f32.mxu1 %vm277_vm1, %v191_v35  ;;  %v222_v33 = vld [vmem:[%s6997_s0 + $0x668] sm:$0xff]  ;;  %v95_v34 = vld [vmem:[%s6997_s0 + $0x270] sm:$0xff] }
  0x66   :  { %v223_v35 = vld [vmem:[%s6997_s0 + $0x670] sm:$0xff] }
  0x68   :  { %4035 = vmatmul.mubr.msk.f32.gmra.mrb[46].mxu0 %vm277_vm1, %v64_v36  ;;  %4227 = vmatmul.mubr.msk.f32.gmra.mrb[46].mxu1 %vm277_vm1, %v192_v37  ;;  %v96_v36 = vld [vmem:[%s6997_s0 + $0x278] sm:$0xff] }
  0x69   :  { %4037 = vmatprep.mubr.msk.f32.mxu0 %vm277_vm1, %v65_v38  ;;  %4229 = vmatprep.mubr.msk.f32.mxu1 %vm277_vm1, %v193_v39  ;;  %v224_v37 = vld [vmem:[%s6997_s0 + $0x678] sm:$0xff]  ;;  %v97_v38 = vld [vmem:[%s6997_s0 + $0x280] sm:$0xff] }
  0x6a   :  { %v225_v39 = vld [vmem:[%s6997_s0 + $0x680] sm:$0xff] }
  0x6c   :  { %4038 = vmatmul.mubr.msk.f32.gmra.mrb[48].mxu0 %vm277_vm1, %v66_v40  ;;  %4230 = vmatmul.mubr.msk.f32.gmra.mrb[48].mxu1 %vm277_vm1, %v194_v41  ;;  %v98_v40 = vld [vmem:[%s6997_s0 + $0x288] sm:$0xff] }
  0x6d   :  { %4040 = vmatprep.mubr.msk.f32.mxu0 %vm277_vm1, %v67_v42  ;;  %4232 = vmatprep.mubr.msk.f32.mxu1 %vm277_vm1, %v195_v43  ;;  %v226_v41 = vld [vmem:[%s6997_s0 + $0x688] sm:$0xff]  ;;  %v99_v42 = vld [vmem:[%s6997_s0 + $0x290] sm:$0xff] }
  0x6e   :  { %v227_v43 = vld [vmem:[%s6997_s0 + $0x690] sm:$0xff] }
  0x70   :  { %4041 = vmatmul.mubr.msk.f32.gmra.mrb[50].mxu0 %vm277_vm1, %v68_v44  ;;  %4233 = vmatmul.mubr.msk.f32.gmra.mrb[50].mxu1 %vm277_vm1, %v196_v45  ;;  %v100_v44 = vld [vmem:[%s6997_s0 + $0x298] sm:$0xff] }
  0x71   :  { %4043 = vmatprep.mubr.msk.f32.mxu0 %vm277_vm1, %v69_v46  ;;  %4235 = vmatprep.mubr.msk.f32.mxu1 %vm277_vm1, %v197_v47  ;;  %v228_v45 = vld [vmem:[%s6997_s0 + $0x698] sm:$0xff]  ;;  %v101_v46 = vld [vmem:[%s6997_s0 + $0x2a0] sm:$0xff] }
  0x72   :  { %v229_v47 = vld [vmem:[%s6997_s0 + $0x6a0] sm:$0xff] }
  0x74   :  { %4044 = vmatmul.mubr.msk.f32.gmra.mrb[52].mxu0 %vm277_vm1, %v70_v48  ;;  %4236 = vmatmul.mubr.msk.f32.gmra.mrb[52].mxu1 %vm277_vm1, %v198_v49  ;;  %v102_v48 = vld [vmem:[%s6997_s0 + $0x2a8] sm:$0xff] }
  0x75   :  { %4046 = vmatprep.mubr.msk.f32.mxu0 %vm277_vm1, %v71_v50  ;;  %4238 = vmatprep.mubr.msk.f32.mxu1 %vm277_vm1, %v199_v51  ;;  %v230_v49 = vld [vmem:[%s6997_s0 + $0x6a8] sm:$0xff]  ;;  %v103_v50 = vld [vmem:[%s6997_s0 + $0x2b0] sm:$0xff] }
  0x76   :  { %v231_v51 = vld [vmem:[%s6997_s0 + $0x6b0] sm:$0xff] }
  0x78   :  { %4047 = vmatmul.mubr.msk.f32.gmra.mrb[54].mxu0 %vm277_vm1, %v72_v52  ;;  %4239 = vmatmul.mubr.msk.f32.gmra.mrb[54].mxu1 %vm277_vm1, %v200_v53  ;;  %v104_v52 = vld [vmem:[%s6997_s0 + $0x2b8] sm:$0xff] }
  0x79   :  { %4049 = vmatprep.mubr.msk.f32.mxu0 %vm277_vm1, %v73_v54  ;;  %4241 = vmatprep.mubr.msk.f32.mxu1 %vm277_vm1, %v201_v55  ;;  %v232_v53 = vld [vmem:[%s6997_s0 + $0x6b8] sm:$0xff]  ;;  %v105_v54 = vld [vmem:[%s6997_s0 + $0x2c0] sm:$0xff] }
  0x7a   :  { %v233_v55 = vld [vmem:[%s6997_s0 + $0x6c0] sm:$0xff] }
  0x7c   :  { %4050 = vmatmul.mubr.msk.f32.gmra.mrb[56].mxu0 %vm277_vm1, %v74_v56  ;;  %4242 = vmatmul.mubr.msk.f32.gmra.mrb[56].mxu1 %vm277_vm1, %v202_v57  ;;  %v106_v56 = vld [vmem:[%s6997_s0 + $0x2c8] sm:$0xff] }
  0x7d   :  { %4052 = vmatprep.mubr.msk.f32.mxu0 %vm277_vm1, %v75_v58  ;;  %4244 = vmatprep.mubr.msk.f32.mxu1 %vm277_vm1, %v203_v59  ;;  %v234_v57 = vld [vmem:[%s6997_s0 + $0x6c8] sm:$0xff]  ;;  %v107_v58 = vld [vmem:[%s6997_s0 + $0x2d0] sm:$0xff] }
  0x7e   :  { %v235_v59 = vld [vmem:[%s6997_s0 + $0x6d0] sm:$0xff] }
  0x80   :  { %4053 = vmatmul.mubr.msk.f32.gmra.mrb[58].mxu0 %vm277_vm1, %v76_v60  ;;  %4245 = vmatmul.mubr.msk.f32.gmra.mrb[58].mxu1 %vm277_vm1, %v204_v61  ;;  %v108_v60 = vld [vmem:[%s6997_s0 + $0x2d8] sm:$0xff] }
  0x81   :  { %4055 = vmatprep.mubr.msk.f32.mxu0 %vm277_vm1, %v77_v62  ;;  %4247 = vmatprep.mubr.msk.f32.mxu1 %vm277_vm1, %v205_v63  ;;  %v236_v61 = vld [vmem:[%s6997_s0 + $0x6d8] sm:$0xff]  ;;  %v109_v62 = vld [vmem:[%s6997_s0 + $0x2e0] sm:$0xff] }
  0x82   :  { %v237_v63 = vld [vmem:[%s6997_s0 + $0x6e0] sm:$0xff] }
  0x84   :  { %4056 = vmatmul.mubr.msk.f32.gmra.mrb[60].mxu0 %vm277_vm1, %v78_v0  ;;  %4248 = vmatmul.mubr.msk.f32.gmra.mrb[60].mxu1 %vm277_vm1, %v206_v1  ;;  %v110_v0 = vld [vmem:[%s6997_s0 + $0x2e8] sm:$0xff] }
  0x85   :  { %4058 = vmatprep.mubr.msk.f32.mxu0 %vm277_vm1, %v79_v2  ;;  %4250 = vmatprep.mubr.msk.f32.mxu1 %vm277_vm1, %v207_v3  ;;  %v238_v1 = vld [vmem:[%s6997_s0 + $0x6e8] sm:$0xff]  ;;  %v111_v2 = vld [vmem:[%s6997_s0 + $0x2f0] sm:$0xff] }
  0x86   :  { %v239_v3 = vld [vmem:[%s6997_s0 + $0x6f0] sm:$0xff] }
  0x88   :  { %4059 = vmatmul.mubr.msk.f32.gmra.mrb[62].mxu0 %vm277_vm1, %v80_v4  ;;  %4251 = vmatmul.mubr.msk.f32.gmra.mrb[62].mxu1 %vm277_vm1, %v208_v5  ;;  %v112_v4 = vld [vmem:[%s6997_s0 + $0x2f8] sm:$0xff] }
  0x89   :  { %4061 = vmatprep.mubr.msk.f32.mxu0 %vm277_vm1, %v81_v6  ;;  %4253 = vmatprep.mubr.msk.f32.mxu1 %vm277_vm1, %v209_v7  ;;  %v240_v5 = vld [vmem:[%s6997_s0 + $0x6f8] sm:$0xff]  ;;  %v113_v6 = vld [vmem:[%s6997_s0 + $0x300] sm:$0xff] }
  0x8a   :  { %v241_v7 = vld [vmem:[%s6997_s0 + $0x700] sm:$0xff] }
  0x8c   :  { %4062 = vmatmul.mubr.msk.f32.gmra.mrb[64].mxu0 %vm277_vm1, %v82_v8  ;;  %4254 = vmatmul.mubr.msk.f32.gmra.mrb[64].mxu1 %vm277_vm1, %v210_v9  ;;  %v114_v8 = vld [vmem:[%s6997_s0 + $0x308] sm:$0xff] }
  0x8d   :  { %4064 = vmatprep.mubr.msk.f32.mxu0 %vm277_vm1, %v83_v10  ;;  %4256 = vmatprep.mubr.msk.f32.mxu1 %vm277_vm1, %v211_v11  ;;  %v242_v9 = vld [vmem:[%s6997_s0 + $0x708] sm:$0xff]  ;;  %v115_v10 = vld [vmem:[%s6997_s0 + $0x310] sm:$0xff] }
  0x8e   :  { %v243_v11 = vld [vmem:[%s6997_s0 + $0x710] sm:$0xff] }
  0x90   :  { %4065 = vmatmul.mubr.msk.f32.gmra.mrb[66].mxu0 %vm277_vm1, %v84_v12  ;;  %4257 = vmatmul.mubr.msk.f32.gmra.mrb[66].mxu1 %vm277_vm1, %v212_v13  ;;  %v116_v12 = vld [vmem:[%s6997_s0 + $0x318] sm:$0xff] }
  0x91   :  { %4067 = vmatprep.mubr.msk.f32.mxu0 %vm277_vm1, %v85_v14  ;;  %4259 = vmatprep.mubr.msk.f32.mxu1 %vm277_vm1, %v213_v15  ;;  %v244_v13 = vld [vmem:[%s6997_s0 + $0x718] sm:$0xff]  ;;  %v117_v14 = vld [vmem:[%s6997_s0 + $0x320] sm:$0xff] }
  0x92   :  { %v245_v15 = vld [vmem:[%s6997_s0 + $0x720] sm:$0xff] }
  0x94   :  { %4068 = vmatmul.mubr.msk.f32.gmra.mrb[68].mxu0 %vm277_vm1, %v86_v16  ;;  %4260 = vmatmul.mubr.msk.f32.gmra.mrb[68].mxu1 %vm277_vm1, %v214_v17  ;;  %v118_v16 = vld [vmem:[%s6997_s0 + $0x328] sm:$0xff] }
  0x95   :  { %4070 = vmatprep.mubr.msk.f32.mxu0 %vm277_vm1, %v87_v18  ;;  %4262 = vmatprep.mubr.msk.f32.mxu1 %vm277_vm1, %v215_v19  ;;  %v246_v17 = vld [vmem:[%s6997_s0 + $0x728] sm:$0xff]  ;;  %v119_v18 = vld [vmem:[%s6997_s0 + $0x330] sm:$0xff] }
  0x96   :  { %v247_v19 = vld [vmem:[%s6997_s0 + $0x730] sm:$0xff] }
  0x98   :  { %4071 = vmatmul.mubr.msk.f32.gmra.mrb[70].mxu0 %vm277_vm1, %v88_v20  ;;  %4263 = vmatmul.mubr.msk.f32.gmra.mrb[70].mxu1 %vm277_vm1, %v216_v21  ;;  %v120_v20 = vld [vmem:[%s6997_s0 + $0x338] sm:$0xff] }
  0x99   :  { %4073 = vmatprep.mubr.msk.f32.mxu0 %vm277_vm1, %v89_v22  ;;  %4265 = vmatprep.mubr.msk.f32.mxu1 %vm277_vm1, %v217_v23  ;;  %v248_v21 = vld [vmem:[%s6997_s0 + $0x738] sm:$0xff]  ;;  %v121_v22 = vld [vmem:[%s6997_s0 + $0x340] sm:$0xff] }
  0x9a   :  { %v249_v23 = vld [vmem:[%s6997_s0 + $0x740] sm:$0xff] }
  0x9c   :  { %4074 = vmatmul.mubr.msk.f32.gmra.mrb[72].mxu0 %vm277_vm1, %v90_v24  ;;  %4266 = vmatmul.mubr.msk.f32.gmra.mrb[72].mxu1 %vm277_vm1, %v218_v25  ;;  %v122_v24 = vld [vmem:[%s6997_s0 + $0x348] sm:$0xff] }
  0x9d   :  { %4076 = vmatprep.mubr.msk.f32.mxu0 %vm277_vm1, %v91_v26  ;;  %4268 = vmatprep.mubr.msk.f32.mxu1 %vm277_vm1, %v219_v27  ;;  %v250_v25 = vld [vmem:[%s6997_s0 + $0x748] sm:$0xff]  ;;  %v123_v26 = vld [vmem:[%s6997_s0 + $0x350] sm:$0xff] }
  0x9e   :  { %v251_v27 = vld [vmem:[%s6997_s0 + $0x750] sm:$0xff] }
  0xa0   :  { %4077 = vmatmul.mubr.msk.f32.gmra.mrb[74].mxu0 %vm277_vm1, %v92_v28  ;;  %4269 = vmatmul.mubr.msk.f32.gmra.mrb[74].mxu1 %vm277_vm1, %v220_v29  ;;  %v5263_v28 = vld [vmem:[%s6998_s2] ss:$0 sm:$0xff]  ;;  %v124_v29 = vld [vmem:[%s6997_s0 + $0x358] sm:$0xff] }
  0xa1   :  { %4079 = vmatprep.mubr.msk.f32.mxu0 %vm277_vm1, %v93_v30  ;;  %4271 = vmatprep.mubr.msk.f32.mxu1 %vm277_vm1, %v221_v31  ;;  %v252_v30 = vld [vmem:[%s6997_s0 + $0x758] sm:$0xff]  ;;  %v125_v31 = vld [vmem:[%s6997_s0 + $0x360] sm:$0xff] }
  0xa4   :  { %4080 = vmatmul.mubr.msk.f32.gmra.mrb[76].mxu0 %vm277_vm1, %v94_v32  ;;  %4272 = vmatmul.mubr.msk.f32.gmra.mrb[76].mxu1 %vm277_vm1, %v222_v33  ;;  %v253_v32 = vld [vmem:[%s6997_s0 + $0x760] sm:$0xff] }
  0xa5   :  { %4082 = vmatprep.mubr.msk.f32.mxu0 %vm277_vm1, %v95_v34  ;;  %4274 = vmatprep.mubr.msk.f32.mxu1 %vm277_vm1, %v223_v35  ;;  %v5282_v34 = vld [vmem:[%s6999_s3] ss:$0 sm:$0xff] }
  0xa8   :  { %4083 = vmatmul.mubr.msk.f32.gmra.mrb[78].mxu0 %vm277_vm1, %v96_v36  ;;  %4275 = vmatmul.mubr.msk.f32.gmra.mrb[78].mxu1 %vm277_vm1, %v224_v37 }
  0xa9   :  { %4085 = vmatprep.mubr.msk.f32.mxu0 %vm277_vm1, %v97_v38  ;;  %4277 = vmatprep.mubr.msk.f32.mxu1 %vm277_vm1, %v225_v39 }
  0xac   :  { %4086 = vmatmul.mubr.msk.f32.gmra.mrb[80].mxu0 %vm277_vm1, %v98_v40  ;;  %4278 = vmatmul.mubr.msk.f32.gmra.mrb[80].mxu1 %vm277_vm1, %v226_v41 }
  0xad   :  { %4088 = vmatprep.mubr.msk.f32.mxu0 %vm277_vm1, %v99_v42  ;;  %4280 = vmatprep.mubr.msk.f32.mxu1 %vm277_vm1, %v227_v43  ;;  %v126_v42 = vld [vmem:[%s6997_s0 + $0x368] sm:$0xff] }
  0xae   :  { %v254_v43 = vld [vmem:[%s6997_s0 + $0x768] sm:$0xff] }
  0xb0   :  { %4089 = vmatmul.mubr.msk.f32.gmra.mrb[82].mxu0 %vm277_vm1, %v100_v44  ;;  %4281 = vmatmul.mubr.msk.f32.gmra.mrb[82].mxu1 %vm277_vm1, %v228_v45 }
  0xb1   :  { %4091 = vmatprep.mubr.msk.f32.mxu0 %vm277_vm1, %v101_v46  ;;  %4283 = vmatprep.mubr.msk.f32.mxu1 %vm277_vm1, %v229_v47  ;;  %v127_v46 = vld [vmem:[%s6997_s0 + $0x370] sm:$0xff] }
  0xb2   :  { %v255_v47 = vld [vmem:[%s6997_s0 + $0x770] sm:$0xff] }
  0xb4   :  { %4092 = vmatmul.mubr.msk.f32.gmra.mrb[84].mxu0 %vm277_vm1, %v102_v48  ;;  %4284 = vmatmul.mubr.msk.f32.gmra.mrb[84].mxu1 %vm277_vm1, %v230_v49 }
  0xb5   :  { %4094 = vmatprep.mubr.msk.f32.mxu0 %vm277_vm1, %v103_v50  ;;  %4286 = vmatprep.mubr.msk.f32.mxu1 %vm277_vm1, %v231_v51 }
  0xb8   :  { %4095 = vmatmul.mubr.msk.f32.gmra.mrb[86].mxu0 %vm277_vm1, %v104_v52  ;;  %4287 = vmatmul.mubr.msk.f32.gmra.mrb[86].mxu1 %vm277_vm1, %v232_v53 }
  0xb9   :  { %4097 = vmatprep.mubr.msk.f32.mxu0 %vm277_vm1, %v105_v54  ;;  %4289 = vmatprep.mubr.msk.f32.mxu1 %vm277_vm1, %v233_v55 }
  0xbc   :  { %4098 = vmatmul.mubr.msk.f32.gmra.mrb[88].mxu0 %vm277_vm1, %v106_v56  ;;  %4290 = vmatmul.mubr.msk.f32.gmra.mrb[88].mxu1 %vm277_vm1, %v234_v57 }
  0xbd   :  { %4100 = vmatprep.mubr.msk.f32.mxu0 %vm277_vm1, %v107_v58  ;;  %4292 = vmatprep.mubr.msk.f32.mxu1 %vm277_vm1, %v235_v59 }
  0xc0   :  { %4101 = vmatmul.mubr.msk.f32.gmra.mrb[90].mxu0 %vm277_vm1, %v108_v60  ;;  %4293 = vmatmul.mubr.msk.f32.gmra.mrb[90].mxu1 %vm277_vm1, %v236_v61 }
  0xc1   :  { %4103 = vmatprep.mubr.msk.f32.mxu0 %vm277_vm1, %v109_v62  ;;  %4295 = vmatprep.mubr.msk.f32.mxu1 %vm277_vm1, %v237_v63  ;;  %v128_v62 = vld [vmem:[%s6997_s0 + $0x378] sm:$0xff] }
  0xc2   :  { %v256_v63 = vld [vmem:[%s6997_s0 + $0x778] sm:$0xff] }
  0xc4   :  { %4104 = vmatmul.mubr.msk.f32.gmra.mrb[92].mxu0 %vm277_vm1, %v110_v0  ;;  %4296 = vmatmul.mubr.msk.f32.gmra.mrb[92].mxu1 %vm277_vm1, %v238_v1 }
  0xc5   :  { %4106 = vmatprep.mubr.msk.f32.mxu0 %vm277_vm1, %v111_v2  ;;  %4298 = vmatprep.mubr.msk.f32.mxu1 %vm277_vm1, %v239_v3  ;;  %v129_v2 = vld [vmem:[%s6997_s0 + $0x380] sm:$0xff] }
  0xc6   :  { %v257_v3 = vld [vmem:[%s6997_s0 + $0x780] sm:$0xff] }
  0xc8   :  { %4107 = vmatmul.mubr.msk.f32.gmra.mrb[94].mxu0 %vm277_vm1, %v112_v4  ;;  %4299 = vmatmul.mubr.msk.f32.gmra.mrb[94].mxu1 %vm277_vm1, %v240_v5 }
  0xc9   :  { %4109 = vmatprep.mubr.msk.f32.mxu0 %vm277_vm1, %v113_v6  ;;  %4301 = vmatprep.mubr.msk.f32.mxu1 %vm277_vm1, %v241_v7 }
  0xcc   :  { %4110 = vmatmul.mubr.msk.f32.gmra.mrb[96].mxu0 %vm277_vm1, %v114_v8  ;;  %4302 = vmatmul.mubr.msk.f32.gmra.mrb[96].mxu1 %vm277_vm1, %v242_v9 }
  0xcd   :  { %4112 = vmatprep.mubr.msk.f32.mxu0 %vm277_vm1, %v115_v10  ;;  %4304 = vmatprep.mubr.msk.f32.mxu1 %vm277_vm1, %v243_v11 }
  0xd0   :  { %4113 = vmatmul.mubr.msk.f32.gmra.mrb[98].mxu0 %vm277_vm1, %v116_v12  ;;  %4305 = vmatmul.mubr.msk.f32.gmra.mrb[98].mxu1 %vm277_vm1, %v244_v13 }
  0xd1   :  { %4115 = vmatprep.mubr.msk.f32.mxu0 %vm277_vm1, %v117_v14  ;;  %4307 = vmatprep.mubr.msk.f32.mxu1 %vm277_vm1, %v245_v15 }
  0xd4   :  { %4116 = vmatmul.mubr.msk.f32.gmra.mrb[100].mxu0 %vm277_vm1, %v118_v16  ;;  %4308 = vmatmul.mubr.msk.f32.gmra.mrb[100].mxu1 %vm277_vm1, %v246_v17 }
  0xd5   :  { %4118 = vmatprep.mubr.msk.f32.mxu0 %vm277_vm1, %v119_v18  ;;  %4310 = vmatprep.mubr.msk.f32.mxu1 %vm277_vm1, %v247_v19  ;;  %v130_v18 = vld [vmem:[%s6997_s0 + $0x388] sm:$0xff] }
  0xd6   :  { %v258_v19 = vld [vmem:[%s6997_s0 + $0x788] sm:$0xff] }
  0xd8   :  { %4119 = vmatmul.mubr.msk.f32.gmra.mrb[102].mxu0 %vm277_vm1, %v120_v20  ;;  %4311 = vmatmul.mubr.msk.f32.gmra.mrb[102].mxu1 %vm277_vm1, %v248_v21 }
  0xd9   :  { %4121 = vmatprep.mubr.msk.f32.mxu0 %vm277_vm1, %v121_v22  ;;  %4313 = vmatprep.mubr.msk.f32.mxu1 %vm277_vm1, %v249_v23  ;;  %v131_v22 = vld [vmem:[%s6997_s0 + $0x390] sm:$0xff] }
  0xda   :  { %v259_v23 = vld [vmem:[%s6997_s0 + $0x790] sm:$0xff] }
  0xdc   :  { %4122 = vmatmul.mubr.msk.f32.gmra.mrb[104].mxu0 %vm277_vm1, %v122_v24  ;;  %4314 = vmatmul.mubr.msk.f32.gmra.mrb[104].mxu1 %vm277_vm1, %v250_v25 }
  0xdd   :  { %4124 = vmatprep.mubr.msk.f32.mxu0 %vm277_vm1, %v123_v26  ;;  %4316 = vmatprep.mubr.msk.f32.mxu1 %vm277_vm1, %v251_v27 }
  0xdf   :  { %v3967_v33 = vpop.f32.mrb[0].mxu0  ;;  %v4159_v35 = vpop.f32.mrb[0].mxu1 }
  0xe0   :  { %v2403_v36 = vmul.f32 %v3967_v33, %v5263_v28  ;;  %v2531_v37 = vmul.f32 %v4159_v35, %v5263_v28  ;;  %v1116_v38 = vpop.f32.mrb[1].mxu0  ;;  %4125 = vmatmul.mubr.msk.f32.gmra.mrb[106].mxu0 %vm277_vm1, %v124_v29  ;;  %v1756_v39 = vpop.f32.mrb[1].mxu1  ;;  %4317 = vmatmul.mubr.msk.f32.gmra.mrb[106].mxu1 %vm277_vm1, %v252_v30 }
  0xe1   :  { %v2402_v40 = vmul.f32 %v5263_v28, %v1116_v38  ;;  %v2530_v41 = vmul.f32 %v5263_v28, %v1756_v39  ;;  %4127 = vmatprep.mubr.msk.f32.mxu0 %vm277_vm1, %v125_v31  ;;  %4319 = vmatprep.mubr.msk.f32.mxu1 %vm277_vm1, %v253_v32 }
  0xe2   :  { %v2666_v44 = vadd.f32 %v5282_v34, %v2403_v36  ;;  %v2794_v45 = vadd.f32 %v5282_v34, %v2531_v37 }
  0xe3   :  { %v2665_v48 = vadd.f32 %v5282_v34, %v2402_v40  ;;  %v2793_v49 = vadd.f32 %v5282_v34, %v2530_v41  ;;  %v3970_v50 = vpop.f32.mrb[2].mxu0  ;;  %v4162_v51 = vpop.f32.mrb[2].mxu1  ;;  %v132_v40 = vld [vmem:[%s6997_s0 + $0x398] sm:$0xff] }
  0xe4   :  { %v2922_v52 = vmax.f32 %v2666_v44, 0.0  ;;  %v3050_v53 = vmax.f32 %v2794_v45, 0.0  ;;  %v2405_v54 = vmul.f32 %v3970_v50, %v5263_v28  ;;  %v2533_v55 = vmul.f32 %v4162_v51, %v5263_v28  ;;  %v1126_v56 = vpop.f32.mrb[3].mxu0  ;;  %4128 = vmatmul.mubr.msk.f32.gmra.mrb[108].mxu0 %vm277_vm1, %v126_v42  ;;  %v1766_v57 = vpop.f32.mrb[3].mxu1  ;;  %4320 = vmatmul.mubr.msk.f32.gmra.mrb[108].mxu1 %vm277_vm1, %v254_v43  ;;  %v260_v41 = vld [vmem:[%s6997_s0 + $0x798] sm:$0xff]  ;;  %v133_v44 = vld [vmem:[%s6997_s0 + $0x3a0] sm:$0xff] }
  0xe5   :  { %v2921_v58 = vmax.f32 %v2665_v48, 0.0  ;;  %v3049_v59 = vmax.f32 %v2793_v49, 0.0  ;;  %v2404_v60 = vmul.f32 %v5263_v28, %v1126_v56  ;;  %v2532_v61 = vmul.f32 %v5263_v28, %v1766_v57  ;;  %4130 = vmatprep.mubr.msk.f32.mxu0 %vm277_vm1, %v127_v46  ;;  %4322 = vmatprep.mubr.msk.f32.mxu1 %vm277_vm1, %v255_v47  ;;  %v261_v45 = vld [vmem:[%s6997_s0 + $0x7a0] sm:$0xff] }
  0xe6   :  { %3179 = vst.msk [vmem:[%s7000_s4 + $0x8] sm:$0xff] %vm3177_vm4, %v2922_v52  ;;  %3307 = vst.msk [vmem:[%s7000_s4 + $0x408] sm:$0xff] %vm3177_vm4, %v3050_v53  ;;  %v2668_v0 = vadd.f32 %v5282_v34, %v2405_v54  ;;  %v2796_v1 = vadd.f32 %v5282_v34, %v2533_v55 }
  0xe7   :  { %3178 = vst.msk [vmem:[%s7000_s4] sm:$0xff] %vm3177_vm4, %v2921_v58  ;;  %3306 = vst.msk [vmem:[%s7000_s4 + $0x400] sm:$0xff] %vm3177_vm4, %v3049_v59  ;;  %v2667_v4 = vadd.f32 %v5282_v34, %v2404_v60  ;;  %v2795_v5 = vadd.f32 %v5282_v34, %v2532_v61  ;;  %v3973_v6 = vpop.f32.mrb[4].mxu0  ;;  %v4165_v7 = vpop.f32.mrb[4].mxu1  ;;  %v134_v60 = vld [vmem:[%s6997_s0 + $0x3a8] sm:$0xff] }
  0xe8   :  { %v2924_v8 = vmax.f32 %v2668_v0, 0.0  ;;  %v3052_v9 = vmax.f32 %v2796_v1, 0.0  ;;  %v2407_v10 = vmul.f32 %v3973_v6, %v5263_v28  ;;  %v2535_v11 = vmul.f32 %v4165_v7, %v5263_v28  ;;  %v1136_v12 = vpop.f32.mrb[5].mxu0  ;;  %4131 = vmatmul.mubr.msk.f32.gmra.mrb[110].mxu0 %vm277_vm1, %v128_v62  ;;  %v1776_v13 = vpop.f32.mrb[5].mxu1  ;;  %4323 = vmatmul.mubr.msk.f32.gmra.mrb[110].mxu1 %vm277_vm1, %v256_v63  ;;  %v262_v61 = vld [vmem:[%s6997_s0 + $0x7a8] sm:$0xff]  ;;  %v135_v0 = vld [vmem:[%s6997_s0 + $0x3b0] sm:$0xff] }
  0xe9   :  { %v2923_v14 = vmax.f32 %v2667_v4, 0.0  ;;  %v3051_v15 = vmax.f32 %v2795_v5, 0.0  ;;  %v2406_v16 = vmul.f32 %v5263_v28, %v1136_v12  ;;  %v2534_v17 = vmul.f32 %v5263_v28, %v1776_v13  ;;  %4133 = vmatprep.mubr.msk.f32.mxu0 %vm277_vm1, %v129_v2  ;;  %4325 = vmatprep.mubr.msk.f32.mxu1 %vm277_vm1, %v257_v3  ;;  %v263_v1 = vld [vmem:[%s6997_s0 + $0x7b0] sm:$0xff] }
  0xea   :  { %3181 = vst.msk [vmem:[%s7000_s4 + $0x18] sm:$0xff] %vm3177_vm4, %v2924_v8  ;;  %3309 = vst.msk [vmem:[%s7000_s4 + $0x418] sm:$0xff] %vm3177_vm4, %v3052_v9  ;;  %v2670_v20 = vadd.f32 %v5282_v34, %v2407_v10  ;;  %v2798_v21 = vadd.f32 %v5282_v34, %v2535_v11 }
  0xeb   :  { %3180 = vst.msk [vmem:[%s7000_s4 + $0x10] sm:$0xff] %vm3177_vm4, %v2923_v14  ;;  %3308 = vst.msk [vmem:[%s7000_s4 + $0x410] sm:$0xff] %vm3177_vm4, %v3051_v15  ;;  %v2669_v24 = vadd.f32 %v5282_v34, %v2406_v16  ;;  %v2797_v25 = vadd.f32 %v5282_v34, %v2534_v17  ;;  %v3976_v26 = vpop.f32.mrb[6].mxu0  ;;  %v4168_v27 = vpop.f32.mrb[6].mxu1  ;;  %v136_v16 = vld [vmem:[%s6997_s0 + $0x3b8] sm:$0xff] }
  0xec   :  { %v2926_v29 = vmax.f32 %v2670_v20, 0.0  ;;  %v3054_v30 = vmax.f32 %v2798_v21, 0.0  ;;  %v2409_v31 = vmul.f32 %v3976_v26, %v5263_v28  ;;  %v2537_v32 = vmul.f32 %v4168_v27, %v5263_v28  ;;  %v1146_v33 = vpop.f32.mrb[7].mxu0  ;;  %4134 = vmatmul.mubr.msk.f32.gmra.mrb[112].mxu0 %vm277_vm1, %v130_v18  ;;  %v1786_v35 = vpop.f32.mrb[7].mxu1  ;;  %4326 = vmatmul.mubr.msk.f32.gmra.mrb[112].mxu1 %vm277_vm1, %v258_v19  ;;  %v264_v17 = vld [vmem:[%s6997_s0 + $0x7b8] sm:$0xff]  ;;  %v137_v20 = vld [vmem:[%s6997_s0 + $0x3c0] sm:$0xff] }
  0xed   :  { %v2925_v36 = vmax.f32 %v2669_v24, 0.0  ;;  %v3053_v37 = vmax.f32 %v2797_v25, 0.0  ;;  %v2408_v38 = vmul.f32 %v5263_v28, %v1146_v33  ;;  %v2536_v39 = vmul.f32 %v5263_v28, %v1786_v35  ;;  %4136 = vmatprep.mubr.msk.f32.mxu0 %vm277_vm1, %v131_v22  ;;  %4328 = vmatprep.mubr.msk.f32.mxu1 %vm277_vm1, %v259_v23  ;;  %v265_v21 = vld [vmem:[%s6997_s0 + $0x7c0] sm:$0xff] }
  0xee   :  { %3183 = vst.msk [vmem:[%s7000_s4 + $0x28] sm:$0xff] %vm3177_vm4, %v2926_v29  ;;  %3311 = vst.msk [vmem:[%s7000_s4 + $0x428] sm:$0xff] %vm3177_vm4, %v3054_v30  ;;  %v2672_v42 = vadd.f32 %v5282_v34, %v2409_v31  ;;  %v2800_v43 = vadd.f32 %v5282_v34, %v2537_v32 }
  0xef   :  { %3182 = vst.msk [vmem:[%s7000_s4 + $0x20] sm:$0xff] %vm3177_vm4, %v2925_v36  ;;  %3310 = vst.msk [vmem:[%s7000_s4 + $0x420] sm:$0xff] %vm3177_vm4, %v3053_v37  ;;  %v2671_v46 = vadd.f32 %v5282_v34, %v2408_v38  ;;  %v2799_v47 = vadd.f32 %v5282_v34, %v2536_v39  ;;  %v3979_v48 = vpop.f32.mrb[8].mxu0  ;;  %v4171_v49 = vpop.f32.mrb[8].mxu1  ;;  %v138_v38 = vld [vmem:[%s6997_s0 + $0x3c8] sm:$0xff] }
  0xf0   :  { %v2928_v50 = vmax.f32 %v2672_v42, 0.0  ;;  %v3056_v51 = vmax.f32 %v2800_v43, 0.0  ;;  %v2411_v52 = vmul.f32 %v3979_v48, %v5263_v28  ;;  %v2539_v53 = vmul.f32 %v4171_v49, %v5263_v28  ;;  %v1156_v54 = vpop.f32.mrb[9].mxu0  ;;  %4137 = vmatmul.mubr.msk.f32.gmra.mrb[114].mxu0 %vm277_vm1, %v132_v40  ;;  %v1796_v55 = vpop.f32.mrb[9].mxu1  ;;  %4329 = vmatmul.mubr.msk.f32.gmra.mrb[114].mxu1 %vm277_vm1, %v260_v41  ;;  %v266_v39 = vld [vmem:[%s6997_s0 + $0x7c8] sm:$0xff]  ;;  %v139_v42 = vld [vmem:[%s6997_s0 + $0x3d0] sm:$0xff] }
  0xf1   :  { %v2927_v56 = vmax.f32 %v2671_v46, 0.0  ;;  %v3055_v57 = vmax.f32 %v2799_v47, 0.0  ;;  %v2410_v58 = vmul.f32 %v5263_v28, %v1156_v54  ;;  %v2538_v59 = vmul.f32 %v5263_v28, %v1796_v55  ;;  %4139 = vmatprep.mubr.msk.f32.mxu0 %vm277_vm1, %v133_v44  ;;  %4331 = vmatprep.mubr.msk.f32.mxu1 %vm277_vm1, %v261_v45  ;;  %v267_v43 = vld [vmem:[%s6997_s0 + $0x7d0] sm:$0xff] }
  0xf2   :  { %3185 = vst.msk [vmem:[%s7000_s4 + $0x38] sm:$0xff] %vm3177_vm4, %v2928_v50  ;;  %3313 = vst.msk [vmem:[%s7000_s4 + $0x438] sm:$0xff] %vm3177_vm4, %v3056_v51  ;;  %v2674_v62 = vadd.f32 %v5282_v34, %v2411_v52  ;;  %v2802_v63 = vadd.f32 %v5282_v34, %v2539_v53 }
  0xf3   :  { %3184 = vst.msk [vmem:[%s7000_s4 + $0x30] sm:$0xff] %vm3177_vm4, %v2927_v56  ;;  %3312 = vst.msk [vmem:[%s7000_s4 + $0x430] sm:$0xff] %vm3177_vm4, %v3055_v57  ;;  %v2673_v2 = vadd.f32 %v5282_v34, %v2410_v58  ;;  %v2801_v3 = vadd.f32 %v5282_v34, %v2538_v59  ;;  %v3982_v4 = vpop.f32.mrb[10].mxu0  ;;  %v4174_v5 = vpop.f32.mrb[10].mxu1  ;;  %v140_v58 = vld [vmem:[%s6997_s0 + $0x3d8] sm:$0xff] }
  0xf4   :  { %v2930_v6 = vmax.f32 %v2674_v62, 0.0  ;;  %v3058_v7 = vmax.f32 %v2802_v63, 0.0  ;;  %v2413_v8 = vmul.f32 %v3982_v4, %v5263_v28  ;;  %v2541_v9 = vmul.f32 %v4174_v5, %v5263_v28  ;;  %v1166_v10 = vpop.f32.mrb[11].mxu0  ;;  %4140 = vmatmul.mubr.msk.f32.gmra.mrb[116].mxu0 %vm277_vm1, %v134_v60  ;;  %v1806_v11 = vpop.f32.mrb[11].mxu1  ;;  %4332 = vmatmul.mubr.msk.f32.gmra.mrb[116].mxu1 %vm277_vm1, %v262_v61  ;;  %v268_v59 = vld [vmem:[%s6997_s0 + $0x7d8] sm:$0xff]  ;;  %v141_v62 = vld [vmem:[%s6997_s0 + $0x3e0] sm:$0xff] }
  0xf5   :  { %v2929_v12 = vmax.f32 %v2673_v2, 0.0  ;;  %v3057_v13 = vmax.f32 %v2801_v3, 0.0  ;;  %v2412_v14 = vmul.f32 %v5263_v28, %v1166_v10  ;;  %v2540_v15 = vmul.f32 %v5263_v28, %v1806_v11  ;;  %4142 = vmatprep.mubr.msk.f32.mxu0 %vm277_vm1, %v135_v0  ;;  %4334 = vmatprep.mubr.msk.f32.mxu1 %vm277_vm1, %v263_v1  ;;  %v269_v63 = vld [vmem:[%s6997_s0 + $0x7e0] sm:$0xff] }
  0xf6   :  { %3187 = vst.msk [vmem:[%s7000_s4 + $0x48] sm:$0xff] %vm3177_vm4, %v2930_v6  ;;  %3315 = vst.msk [vmem:[%s7000_s4 + $0x448] sm:$0xff] %vm3177_vm4, %v3058_v7  ;;  %v2676_v18 = vadd.f32 %v5282_v34, %v2413_v8  ;;  %v2804_v19 = vadd.f32 %v5282_v34, %v2541_v9 }
  0xf7   :  { %3186 = vst.msk [vmem:[%s7000_s4 + $0x40] sm:$0xff] %vm3177_vm4, %v2929_v12  ;;  %3314 = vst.msk [vmem:[%s7000_s4 + $0x440] sm:$0xff] %vm3177_vm4, %v3057_v13  ;;  %v2675_v22 = vadd.f32 %v5282_v34, %v2412_v14  ;;  %v2803_v23 = vadd.f32 %v5282_v34, %v2540_v15  ;;  %v3985_v24 = vpop.f32.mrb[12].mxu0  ;;  %v4177_v25 = vpop.f32.mrb[12].mxu1  ;;  %v142_v14 = vld [vmem:[%s6997_s0 + $0x3e8] sm:$0xff] }
  0xf8   :  { %v2932_v26 = vmax.f32 %v2676_v18, 0.0  ;;  %v3060_v27 = vmax.f32 %v2804_v19, 0.0  ;;  %v2415_v29 = vmul.f32 %v3985_v24, %v5263_v28  ;;  %v2543_v30 = vmul.f32 %v4177_v25, %v5263_v28  ;;  %v1176_v31 = vpop.f32.mrb[13].mxu0  ;;  %4143 = vmatmul.mubr.msk.f32.gmra.mrb[118].mxu0 %vm277_vm1, %v136_v16  ;;  %v1816_v32 = vpop.f32.mrb[13].mxu1  ;;  %4335 = vmatmul.mubr.msk.f32.gmra.mrb[118].mxu1 %vm277_vm1, %v264_v17  ;;  %v270_v15 = vld [vmem:[%s6997_s0 + $0x7e8] sm:$0xff]  ;;  %v143_v18 = vld [vmem:[%s6997_s0 + $0x3f0] sm:$0xff] }
  0xf9   :  { %v2931_v33 = vmax.f32 %v2675_v22, 0.0  ;;  %v3059_v35 = vmax.f32 %v2803_v23, 0.0  ;;  %v2414_v36 = vmul.f32 %v5263_v28, %v1176_v31  ;;  %v2542_v37 = vmul.f32 %v5263_v28, %v1816_v32  ;;  %4145 = vmatprep.mubr.msk.f32.mxu0 %vm277_vm1, %v137_v20  ;;  %4337 = vmatprep.mubr.msk.f32.mxu1 %vm277_vm1, %v265_v21  ;;  %v271_v19 = vld [vmem:[%s6997_s0 + $0x7f0] sm:$0xff] }
  0xfa   :  { %3189 = vst.msk [vmem:[%s7000_s4 + $0x58] sm:$0xff] %vm3177_vm4, %v2932_v26  ;;  %3317 = vst.msk [vmem:[%s7000_s4 + $0x458] sm:$0xff] %vm3177_vm4, %v3060_v27  ;;  %v2678_v40 = vadd.f32 %v5282_v34, %v2415_v29  ;;  %v2806_v41 = vadd.f32 %v5282_v34, %v2543_v30 }
  0xfb   :  { %3188 = vst.msk [vmem:[%s7000_s4 + $0x50] sm:$0xff] %vm3177_vm4, %v2931_v33  ;;  %3316 = vst.msk [vmem:[%s7000_s4 + $0x450] sm:$0xff] %vm3177_vm4, %v3059_v35  ;;  %v2677_v44 = vadd.f32 %v5282_v34, %v2414_v36  ;;  %v2805_v45 = vadd.f32 %v5282_v34, %v2542_v37  ;;  %v3988_v46 = vpop.f32.mrb[14].mxu0  ;;  %v4180_v47 = vpop.f32.mrb[14].mxu1  ;;  %v144_v36 = vld [vmem:[%s6997_s0 + $0x3f8] sm:$0xff] }
  0xfc   :  { %v2934_v48 = vmax.f32 %v2678_v40, 0.0  ;;  %v3062_v49 = vmax.f32 %v2806_v41, 0.0  ;;  %v2417_v50 = vmul.f32 %v3988_v46, %v5263_v28  ;;  %v2545_v51 = vmul.f32 %v4180_v47, %v5263_v28  ;;  %v1186_v52 = vpop.f32.mrb[15].mxu0  ;;  %4146 = vmatmul.mubr.msk.f32.gmra.mrb[120].mxu0 %vm277_vm1, %v138_v38  ;;  %v1826_v53 = vpop.f32.mrb[15].mxu1  ;;  %4338 = vmatmul.mubr.msk.f32.gmra.mrb[120].mxu1 %vm277_vm1, %v266_v39  ;;  %v272_v37 = vld [vmem:[%s6997_s0 + $0x7f8] sm:$0xff] }
  0xfd   :  { %v2933_v54 = vmax.f32 %v2677_v44, 0.0  ;;  %v3061_v55 = vmax.f32 %v2805_v45, 0.0  ;;  %v2416_v56 = vmul.f32 %v5263_v28, %v1186_v52  ;;  %v2544_v57 = vmul.f32 %v5263_v28, %v1826_v53  ;;  %4148 = vmatprep.mubr.msk.f32.mxu0 %vm277_vm1, %v139_v42  ;;  %4340 = vmatprep.mubr.msk.f32.mxu1 %vm277_vm1, %v267_v43 }
  0xfe   :  { %3191 = vst.msk [vmem:[%s7000_s4 + $0x68] sm:$0xff] %vm3177_vm4, %v2934_v48  ;;  %3319 = vst.msk [vmem:[%s7000_s4 + $0x468] sm:$0xff] %vm3177_vm4, %v3062_v49  ;;  %v2680_v60 = vadd.f32 %v5282_v34, %v2417_v50  ;;  %v2808_v61 = vadd.f32 %v5282_v34, %v2545_v51 }
  0xff   :  { %3190 = vst.msk [vmem:[%s7000_s4 + $0x60] sm:$0xff] %vm3177_vm4, %v2933_v54  ;;  %3318 = vst.msk [vmem:[%s7000_s4 + $0x460] sm:$0xff] %vm3177_vm4, %v3061_v55  ;;  %v2679_v0 = vadd.f32 %v5282_v34, %v2416_v56  ;;  %v2807_v1 = vadd.f32 %v5282_v34, %v2544_v57  ;;  %v3991_v2 = vpop.f32.mrb[16].mxu0  ;;  %v4183_v3 = vpop.f32.mrb[16].mxu1 }
 0x100   :  { %v2936_v4 = vmax.f32 %v2680_v60, 0.0  ;;  %v3064_v5 = vmax.f32 %v2808_v61, 0.0  ;;  %v2419_v6 = vmul.f32 %v3991_v2, %v5263_v28  ;;  %v2547_v7 = vmul.f32 %v4183_v3, %v5263_v28  ;;  %v1196_v8 = vpop.f32.mrb[17].mxu0  ;;  %4149 = vmatmul.mubr.msk.f32.gmra.mrb[122].mxu0 %vm277_vm1, %v140_v58  ;;  %v1836_v9 = vpop.f32.mrb[17].mxu1  ;;  %4341 = vmatmul.mubr.msk.f32.gmra.mrb[122].mxu1 %vm277_vm1, %v268_v59 }
 0x101   :  { %v2935_v10 = vmax.f32 %v2679_v0, 0.0  ;;  %v3063_v11 = vmax.f32 %v2807_v1, 0.0  ;;  %v2418_v12 = vmul.f32 %v5263_v28, %v1196_v8  ;;  %v2546_v13 = vmul.f32 %v5263_v28, %v1836_v9  ;;  %4151 = vmatprep.mubr.msk.f32.mxu0 %vm277_vm1, %v141_v62  ;;  %4343 = vmatprep.mubr.msk.f32.mxu1 %vm277_vm1, %v269_v63 }
 0x102   :  { %3193 = vst.msk [vmem:[%s7000_s4 + $0x78] sm:$0xff] %vm3177_vm4, %v2936_v4  ;;  %3321 = vst.msk [vmem:[%s7000_s4 + $0x478] sm:$0xff] %vm3177_vm4, %v3064_v5  ;;  %v2682_v16 = vadd.f32 %v5282_v34, %v2419_v6  ;;  %v2810_v17 = vadd.f32 %v5282_v34, %v2547_v7 }
 0x103   :  { %3192 = vst.msk [vmem:[%s7000_s4 + $0x70] sm:$0xff] %vm3177_vm4, %v2935_v10  ;;  %3320 = vst.msk [vmem:[%s7000_s4 + $0x470] sm:$0xff] %vm3177_vm4, %v3063_v11  ;;  %v2681_v20 = vadd.f32 %v5282_v34, %v2418_v12  ;;  %v2809_v21 = vadd.f32 %v5282_v34, %v2546_v13  ;;  %v3994_v22 = vpop.f32.mrb[18].mxu0  ;;  %v4186_v23 = vpop.f32.mrb[18].mxu1 }
 0x104   :  { %v2938_v24 = vmax.f32 %v2682_v16, 0.0  ;;  %v3066_v25 = vmax.f32 %v2810_v17, 0.0  ;;  %v2421_v26 = vmul.f32 %v3994_v22, %v5263_v28  ;;  %v2549_v27 = vmul.f32 %v4186_v23, %v5263_v28  ;;  %v1206_v29 = vpop.f32.mrb[19].mxu0  ;;  %4152 = vmatmul.mubr.msk.f32.gmra.mrb[124].mxu0 %vm277_vm1, %v142_v14  ;;  %v1846_v30 = vpop.f32.mrb[19].mxu1  ;;  %4344 = vmatmul.mubr.msk.f32.gmra.mrb[124].mxu1 %vm277_vm1, %v270_v15 }
 0x105   :  { %v2937_v31 = vmax.f32 %v2681_v20, 0.0  ;;  %v3065_v32 = vmax.f32 %v2809_v21, 0.0  ;;  %v2420_v33 = vmul.f32 %v5263_v28, %v1206_v29  ;;  %v2548_v35 = vmul.f32 %v5263_v28, %v1846_v30  ;;  %4154 = vmatprep.mubr.msk.f32.mxu0 %vm277_vm1, %v143_v18  ;;  %4346 = vmatprep.mubr.msk.f32.mxu1 %vm277_vm1, %v271_v19 }
 0x106   :  { %3195 = vst.msk [vmem:[%s7000_s4 + $0x88] sm:$0xff] %vm3177_vm4, %v2938_v24  ;;  %3323 = vst.msk [vmem:[%s7000_s4 + $0x488] sm:$0xff] %vm3177_vm4, %v3066_v25  ;;  %v2684_v38 = vadd.f32 %v5282_v34, %v2421_v26  ;;  %v2812_v39 = vadd.f32 %v5282_v34, %v2549_v27 }
 0x107   :  { %3194 = vst.msk [vmem:[%s7000_s4 + $0x80] sm:$0xff] %vm3177_vm4, %v2937_v31  ;;  %3322 = vst.msk [vmem:[%s7000_s4 + $0x480] sm:$0xff] %vm3177_vm4, %v3065_v32  ;;  %v2683_v40 = vadd.f32 %v5282_v34, %v2420_v33  ;;  %v2811_v41 = vadd.f32 %v5282_v34, %v2548_v35  ;;  %v3997_v42 = vpop.f32.mrb[20].mxu0  ;;  %v4189_v43 = vpop.f32.mrb[20].mxu1 }
 0x108   :  { %v2940_v44 = vmax.f32 %v2684_v38, 0.0  ;;  %v3068_v45 = vmax.f32 %v2812_v39, 0.0  ;;  %v2423_v46 = vmul.f32 %v3997_v42, %v5263_v28  ;;  %v2551_v47 = vmul.f32 %v4189_v43, %v5263_v28  ;;  %v1216_v48 = vpop.f32.mrb[21].mxu0  ;;  %4155 = vmatmul.mubr.msk.f32.gmra.mrb[126].mxu0 %vm277_vm1, %v144_v36  ;;  %v1856_v49 = vpop.f32.mrb[21].mxu1  ;;  %4347 = vmatmul.mubr.msk.f32.gmra.mrb[126].mxu1 %vm277_vm1, %v272_v37 }
 0x109   :  { %v2939_v50 = vmax.f32 %v2683_v40, 0.0  ;;  %v3067_v51 = vmax.f32 %v2811_v41, 0.0  ;;  %v2422_v52 = vmul.f32 %v5263_v28, %v1216_v48  ;;  %v2550_v53 = vmul.f32 %v5263_v28, %v1856_v49 }
 0x10a   :  { %3197 = vst.msk [vmem:[%s7000_s4 + $0x98] sm:$0xff] %vm3177_vm4, %v2940_v44  ;;  %3325 = vst.msk [vmem:[%s7000_s4 + $0x498] sm:$0xff] %vm3177_vm4, %v3068_v45  ;;  %v2686_v54 = vadd.f32 %v5282_v34, %v2423_v46  ;;  %v2814_v55 = vadd.f32 %v5282_v34, %v2551_v47 }
 0x10b   :  { %3196 = vst.msk [vmem:[%s7000_s4 + $0x90] sm:$0xff] %vm3177_vm4, %v2939_v50  ;;  %3324 = vst.msk [vmem:[%s7000_s4 + $0x490] sm:$0xff] %vm3177_vm4, %v3067_v51  ;;  %v2685_v56 = vadd.f32 %v5282_v34, %v2422_v52  ;;  %v2813_v57 = vadd.f32 %v5282_v34, %v2550_v53  ;;  %v4000_v58 = vpop.f32.mrb[22].mxu0  ;;  %v4192_v59 = vpop.f32.mrb[22].mxu1 }
 0x10c   :  { %v2942_v60 = vmax.f32 %v2686_v54, 0.0  ;;  %v3070_v61 = vmax.f32 %v2814_v55, 0.0  ;;  %v2425_v62 = vmul.f32 %v4000_v58, %v5263_v28  ;;  %v2553_v63 = vmul.f32 %v4192_v59, %v5263_v28  ;;  %v1226_v0 = vpop.f32.mrb[23].mxu0  ;;  %v1866_v1 = vpop.f32.mrb[23].mxu1 }
 0x10d   :  { %v2941_v2 = vmax.f32 %v2685_v56, 0.0  ;;  %v3069_v3 = vmax.f32 %v2813_v57, 0.0  ;;  %v2424_v4 = vmul.f32 %v5263_v28, %v1226_v0  ;;  %v2552_v5 = vmul.f32 %v5263_v28, %v1866_v1 }
 0x10e   :  { %3199 = vst.msk [vmem:[%s7000_s4 + $0xa8] sm:$0xff] %vm3177_vm4, %v2942_v60  ;;  %3327 = vst.msk [vmem:[%s7000_s4 + $0x4a8] sm:$0xff] %vm3177_vm4, %v3070_v61  ;;  %v2688_v6 = vadd.f32 %v5282_v34, %v2425_v62  ;;  %v2816_v7 = vadd.f32 %v5282_v34, %v2553_v63 }
 0x10f   :  { %3198 = vst.msk [vmem:[%s7000_s4 + $0xa0] sm:$0xff] %vm3177_vm4, %v2941_v2  ;;  %3326 = vst.msk [vmem:[%s7000_s4 + $0x4a0] sm:$0xff] %vm3177_vm4, %v3069_v3  ;;  %v2687_v8 = vadd.f32 %v5282_v34, %v2424_v4  ;;  %v2815_v9 = vadd.f32 %v5282_v34, %v2552_v5  ;;  %v4003_v10 = vpop.f32.mrb[24].mxu0  ;;  %v4195_v11 = vpop.f32.mrb[24].mxu1 }
 0x110   :  { %v2944_v12 = vmax.f32 %v2688_v6, 0.0  ;;  %v3072_v13 = vmax.f32 %v2816_v7, 0.0  ;;  %v2427_v14 = vmul.f32 %v4003_v10, %v5263_v28  ;;  %v2555_v15 = vmul.f32 %v4195_v11, %v5263_v28  ;;  %v1236_v16 = vpop.f32.mrb[25].mxu0  ;;  %v1876_v17 = vpop.f32.mrb[25].mxu1 }
 0x111   :  { %v2943_v18 = vmax.f32 %v2687_v8, 0.0  ;;  %v3071_v19 = vmax.f32 %v2815_v9, 0.0  ;;  %v2426_v20 = vmul.f32 %v5263_v28, %v1236_v16  ;;  %v2554_v21 = vmul.f32 %v5263_v28, %v1876_v17 }
 0x112   :  { %3201 = vst.msk [vmem:[%s7000_s4 + $0xb8] sm:$0xff] %vm3177_vm4, %v2944_v12  ;;  %3329 = vst.msk [vmem:[%s7000_s4 + $0x4b8] sm:$0xff] %vm3177_vm4, %v3072_v13  ;;  %v2690_v22 = vadd.f32 %v5282_v34, %v2427_v14  ;;  %v2818_v23 = vadd.f32 %v5282_v34, %v2555_v15 }
 0x113   :  { %3200 = vst.msk [vmem:[%s7000_s4 + $0xb0] sm:$0xff] %vm3177_vm4, %v2943_v18  ;;  %3328 = vst.msk [vmem:[%s7000_s4 + $0x4b0] sm:$0xff] %vm3177_vm4, %v3071_v19  ;;  %v2689_v24 = vadd.f32 %v5282_v34, %v2426_v20  ;;  %v2817_v25 = vadd.f32 %v5282_v34, %v2554_v21  ;;  %v4006_v26 = vpop.f32.mrb[26].mxu0  ;;  %v4198_v27 = vpop.f32.mrb[26].mxu1 }
 0x114   :  { %v2946_v29 = vmax.f32 %v2690_v22, 0.0  ;;  %v3074_v30 = vmax.f32 %v2818_v23, 0.0  ;;  %v2429_v31 = vmul.f32 %v4006_v26, %v5263_v28  ;;  %v2557_v32 = vmul.f32 %v4198_v27, %v5263_v28  ;;  %v1246_v33 = vpop.f32.mrb[27].mxu0  ;;  %v1886_v35 = vpop.f32.mrb[27].mxu1 }
 0x115   :  { %v2945_v36 = vmax.f32 %v2689_v24, 0.0  ;;  %v3073_v37 = vmax.f32 %v2817_v25, 0.0  ;;  %v2428_v38 = vmul.f32 %v5263_v28, %v1246_v33  ;;  %v2556_v39 = vmul.f32 %v5263_v28, %v1886_v35 }
 0x116   :  { %3203 = vst.msk [vmem:[%s7000_s4 + $0xc8] sm:$0xff] %vm3177_vm4, %v2946_v29  ;;  %3331 = vst.msk [vmem:[%s7000_s4 + $0x4c8] sm:$0xff] %vm3177_vm4, %v3074_v30  ;;  %v2692_v40 = vadd.f32 %v5282_v34, %v2429_v31  ;;  %v2820_v41 = vadd.f32 %v5282_v34, %v2557_v32 }
 0x117   :  { %3202 = vst.msk [vmem:[%s7000_s4 + $0xc0] sm:$0xff] %vm3177_vm4, %v2945_v36  ;;  %3330 = vst.msk [vmem:[%s7000_s4 + $0x4c0] sm:$0xff] %vm3177_vm4, %v3073_v37  ;;  %v2691_v42 = vadd.f32 %v5282_v34, %v2428_v38  ;;  %v2819_v43 = vadd.f32 %v5282_v34, %v2556_v39  ;;  %v4009_v44 = vpop.f32.mrb[28].mxu0  ;;  %v4201_v45 = vpop.f32.mrb[28].mxu1 }
 0x118   :  { %v2948_v46 = vmax.f32 %v2692_v40, 0.0  ;;  %v3076_v47 = vmax.f32 %v2820_v41, 0.0  ;;  %v2431_v48 = vmul.f32 %v4009_v44, %v5263_v28  ;;  %v2559_v49 = vmul.f32 %v4201_v45, %v5263_v28  ;;  %v1256_v50 = vpop.f32.mrb[29].mxu0  ;;  %v1896_v51 = vpop.f32.mrb[29].mxu1 }
 0x119   :  { %v2947_v52 = vmax.f32 %v2691_v42, 0.0  ;;  %v3075_v53 = vmax.f32 %v2819_v43, 0.0  ;;  %v2430_v54 = vmul.f32 %v5263_v28, %v1256_v50  ;;  %v2558_v55 = vmul.f32 %v5263_v28, %v1896_v51 }
 0x11a   :  { %3205 = vst.msk [vmem:[%s7000_s4 + $0xd8] sm:$0xff] %vm3177_vm4, %v2948_v46  ;;  %3333 = vst.msk [vmem:[%s7000_s4 + $0x4d8] sm:$0xff] %vm3177_vm4, %v3076_v47  ;;  %v2694_v56 = vadd.f32 %v5282_v34, %v2431_v48  ;;  %v2822_v57 = vadd.f32 %v5282_v34, %v2559_v49 }
 0x11b   :  { %3204 = vst.msk [vmem:[%s7000_s4 + $0xd0] sm:$0xff] %vm3177_vm4, %v2947_v52  ;;  %3332 = vst.msk [vmem:[%s7000_s4 + $0x4d0] sm:$0xff] %vm3177_vm4, %v3075_v53  ;;  %v2693_v58 = vadd.f32 %v5282_v34, %v2430_v54  ;;  %v2821_v59 = vadd.f32 %v5282_v34, %v2558_v55  ;;  %v4012_v60 = vpop.f32.mrb[30].mxu0  ;;  %v4204_v61 = vpop.f32.mrb[30].mxu1 }
 0x11c   :  { %v2950_v62 = vmax.f32 %v2694_v56, 0.0  ;;  %v3078_v63 = vmax.f32 %v2822_v57, 0.0  ;;  %v2433_v0 = vmul.f32 %v4012_v60, %v5263_v28  ;;  %v2561_v1 = vmul.f32 %v4204_v61, %v5263_v28  ;;  %v1266_v2 = vpop.f32.mrb[31].mxu0  ;;  %v1906_v3 = vpop.f32.mrb[31].mxu1 }
 0x11d   :  { %v2949_v4 = vmax.f32 %v2693_v58, 0.0  ;;  %v3077_v5 = vmax.f32 %v2821_v59, 0.0  ;;  %v2432_v6 = vmul.f32 %v5263_v28, %v1266_v2  ;;  %v2560_v7 = vmul.f32 %v5263_v28, %v1906_v3 }
 0x11e   :  { %3207 = vst.msk [vmem:[%s7000_s4 + $0xe8] sm:$0xff] %vm3177_vm4, %v2950_v62  ;;  %3335 = vst.msk [vmem:[%s7000_s4 + $0x4e8] sm:$0xff] %vm3177_vm4, %v3078_v63  ;;  %v2696_v8 = vadd.f32 %v5282_v34, %v2433_v0  ;;  %v2824_v9 = vadd.f32 %v5282_v34, %v2561_v1 }
 0x11f   :  { %3206 = vst.msk [vmem:[%s7000_s4 + $0xe0] sm:$0xff] %vm3177_vm4, %v2949_v4  ;;  %3334 = vst.msk [vmem:[%s7000_s4 + $0x4e0] sm:$0xff] %vm3177_vm4, %v3077_v5  ;;  %v2695_v10 = vadd.f32 %v5282_v34, %v2432_v6  ;;  %v2823_v11 = vadd.f32 %v5282_v34, %v2560_v7  ;;  %v4015_v12 = vpop.f32.mrb[32].mxu0  ;;  %v4207_v13 = vpop.f32.mrb[32].mxu1 }
 0x120   :  { %v2952_v14 = vmax.f32 %v2696_v8, 0.0  ;;  %v3080_v15 = vmax.f32 %v2824_v9, 0.0  ;;  %v2435_v16 = vmul.f32 %v4015_v12, %v5263_v28  ;;  %v2563_v17 = vmul.f32 %v4207_v13, %v5263_v28  ;;  %v1276_v18 = vpop.f32.mrb[33].mxu0  ;;  %v1916_v19 = vpop.f32.mrb[33].mxu1 }
 0x121   :  { %v2951_v20 = vmax.f32 %v2695_v10, 0.0  ;;  %v3079_v21 = vmax.f32 %v2823_v11, 0.0  ;;  %v2434_v22 = vmul.f32 %v5263_v28, %v1276_v18  ;;  %v2562_v23 = vmul.f32 %v5263_v28, %v1916_v19 }
 0x122   :  { %3209 = vst.msk [vmem:[%s7000_s4 + $0xf8] sm:$0xff] %vm3177_vm4, %v2952_v14  ;;  %3337 = vst.msk [vmem:[%s7000_s4 + $0x4f8] sm:$0xff] %vm3177_vm4, %v3080_v15  ;;  %v2698_v24 = vadd.f32 %v5282_v34, %v2435_v16  ;;  %v2826_v25 = vadd.f32 %v5282_v34, %v2563_v17 }
 0x123   :  { %3208 = vst.msk [vmem:[%s7000_s4 + $0xf0] sm:$0xff] %vm3177_vm4, %v2951_v20  ;;  %3336 = vst.msk [vmem:[%s7000_s4 + $0x4f0] sm:$0xff] %vm3177_vm4, %v3079_v21  ;;  %v2697_v26 = vadd.f32 %v5282_v34, %v2434_v22  ;;  %v2825_v27 = vadd.f32 %v5282_v34, %v2562_v23  ;;  %v4018_v29 = vpop.f32.mrb[34].mxu0  ;;  %v4210_v30 = vpop.f32.mrb[34].mxu1 }
 0x124   :  { %v2954_v31 = vmax.f32 %v2698_v24, 0.0  ;;  %v3082_v32 = vmax.f32 %v2826_v25, 0.0  ;;  %v2437_v33 = vmul.f32 %v4018_v29, %v5263_v28  ;;  %v2565_v35 = vmul.f32 %v4210_v30, %v5263_v28  ;;  %v1286_v36 = vpop.f32.mrb[35].mxu0  ;;  %v1926_v37 = vpop.f32.mrb[35].mxu1 }
 0x125   :  { %v2953_v38 = vmax.f32 %v2697_v26, 0.0  ;;  %v3081_v39 = vmax.f32 %v2825_v27, 0.0  ;;  %v2436_v40 = vmul.f32 %v5263_v28, %v1286_v36  ;;  %v2564_v41 = vmul.f32 %v5263_v28, %v1926_v37 }
 0x126   :  { %3211 = vst.msk [vmem:[%s7000_s4 + $0x108] sm:$0xff] %vm3177_vm4, %v2954_v31  ;;  %3339 = vst.msk [vmem:[%s7000_s4 + $0x508] sm:$0xff] %vm3177_vm4, %v3082_v32  ;;  %v2700_v42 = vadd.f32 %v5282_v34, %v2437_v33  ;;  %v2828_v43 = vadd.f32 %v5282_v34, %v2565_v35 }
 0x127   :  { %3210 = vst.msk [vmem:[%s7000_s4 + $0x100] sm:$0xff] %vm3177_vm4, %v2953_v38  ;;  %3338 = vst.msk [vmem:[%s7000_s4 + $0x500] sm:$0xff] %vm3177_vm4, %v3081_v39  ;;  %v2699_v44 = vadd.f32 %v5282_v34, %v2436_v40  ;;  %v2827_v45 = vadd.f32 %v5282_v34, %v2564_v41  ;;  %v4021_v46 = vpop.f32.mrb[36].mxu0  ;;  %v4213_v47 = vpop.f32.mrb[36].mxu1 }
 0x128   :  { %v2956_v48 = vmax.f32 %v2700_v42, 0.0  ;;  %v3084_v49 = vmax.f32 %v2828_v43, 0.0  ;;  %v2439_v50 = vmul.f32 %v4021_v46, %v5263_v28  ;;  %v2567_v51 = vmul.f32 %v4213_v47, %v5263_v28  ;;  %v1296_v52 = vpop.f32.mrb[37].mxu0  ;;  %v1936_v53 = vpop.f32.mrb[37].mxu1  ;;  %v5933_v42 = vld [vmem:[%s6998_s2] ss:$0 sm:$0xff] }
 0x129   :  { %v2955_v54 = vmax.f32 %v2699_v44, 0.0  ;;  %v3083_v55 = vmax.f32 %v2827_v45, 0.0  ;;  %v2438_v56 = vmul.f32 %v5263_v28, %v1296_v52  ;;  %v2566_v57 = vmul.f32 %v5263_v28, %v1936_v53  ;;  %v5958_v46 = vld [vmem:[%s6999_s3] ss:$0 sm:$0xff] }
 0x12a   :  { %3213 = vst.msk [vmem:[%s7000_s4 + $0x118] sm:$0xff] %vm3177_vm4, %v2956_v48  ;;  %3341 = vst.msk [vmem:[%s7000_s4 + $0x518] sm:$0xff] %vm3177_vm4, %v3084_v49  ;;  %v2702_v58 = vadd.f32 %v5282_v34, %v2439_v50  ;;  %v2830_v59 = vadd.f32 %v5282_v34, %v2567_v51 }
 0x12b   :  { %3212 = vst.msk [vmem:[%s7000_s4 + $0x110] sm:$0xff] %vm3177_vm4, %v2955_v54  ;;  %3340 = vst.msk [vmem:[%s7000_s4 + $0x510] sm:$0xff] %vm3177_vm4, %v3083_v55  ;;  %v2701_v60 = vadd.f32 %v5282_v34, %v2438_v56  ;;  %v2829_v61 = vadd.f32 %v5282_v34, %v2566_v57  ;;  %v4024_v62 = vpop.f32.mrb[38].mxu0  ;;  %v4216_v63 = vpop.f32.mrb[38].mxu1 }
 0x12c   :  { %v2958_v0 = vmax.f32 %v2702_v58, 0.0  ;;  %v3086_v1 = vmax.f32 %v2830_v59, 0.0  ;;  %v2441_v2 = vmul.f32 %v4024_v62, %v5263_v28  ;;  %v2569_v3 = vmul.f32 %v4216_v63, %v5263_v28  ;;  %v1306_v4 = vpop.f32.mrb[39].mxu0  ;;  %v1946_v5 = vpop.f32.mrb[39].mxu1 }
 0x12d   :  { %v2957_v6 = vmax.f32 %v2701_v60, 0.0  ;;  %v3085_v7 = vmax.f32 %v2829_v61, 0.0  ;;  %v2440_v8 = vmul.f32 %v5263_v28, %v1306_v4  ;;  %v2568_v9 = vmul.f32 %v5263_v28, %v1946_v5 }
 0x12e   :  { %3215 = vst.msk [vmem:[%s7000_s4 + $0x128] sm:$0xff] %vm3177_vm4, %v2958_v0  ;;  %3343 = vst.msk [vmem:[%s7000_s4 + $0x528] sm:$0xff] %vm3177_vm4, %v3086_v1  ;;  %v2704_v10 = vadd.f32 %v5282_v34, %v2441_v2  ;;  %v2832_v11 = vadd.f32 %v5282_v34, %v2569_v3 }
 0x12f   :  { %3214 = vst.msk [vmem:[%s7000_s4 + $0x120] sm:$0xff] %vm3177_vm4, %v2957_v6  ;;  %3342 = vst.msk [vmem:[%s7000_s4 + $0x520] sm:$0xff] %vm3177_vm4, %v3085_v7  ;;  %v2703_v12 = vadd.f32 %v5282_v34, %v2440_v8  ;;  %v2831_v13 = vadd.f32 %v5282_v34, %v2568_v9  ;;  %v4027_v14 = vpop.f32.mrb[40].mxu0  ;;  %v4219_v15 = vpop.f32.mrb[40].mxu1 }
 0x130   :  { %v2960_v16 = vmax.f32 %v2704_v10, 0.0  ;;  %v3088_v17 = vmax.f32 %v2832_v11, 0.0  ;;  %v2443_v18 = vmul.f32 %v4027_v14, %v5263_v28  ;;  %v2571_v19 = vmul.f32 %v4219_v15, %v5263_v28  ;;  %v1316_v20 = vpop.f32.mrb[41].mxu0  ;;  %v1956_v21 = vpop.f32.mrb[41].mxu1 }
 0x131   :  { %v2959_v22 = vmax.f32 %v2703_v12, 0.0  ;;  %v3087_v23 = vmax.f32 %v2831_v13, 0.0  ;;  %v2442_v24 = vmul.f32 %v5263_v28, %v1316_v20  ;;  %v2570_v25 = vmul.f32 %v5263_v28, %v1956_v21 }
 0x132   :  { %3217 = vst.msk [vmem:[%s7000_s4 + $0x138] sm:$0xff] %vm3177_vm4, %v2960_v16  ;;  %3345 = vst.msk [vmem:[%s7000_s4 + $0x538] sm:$0xff] %vm3177_vm4, %v3088_v17  ;;  %v2706_v26 = vadd.f32 %v5282_v34, %v2443_v18  ;;  %v2834_v27 = vadd.f32 %v5282_v34, %v2571_v19 }
 0x133   :  { %3216 = vst.msk [vmem:[%s7000_s4 + $0x130] sm:$0xff] %vm3177_vm4, %v2959_v22  ;;  %3344 = vst.msk [vmem:[%s7000_s4 + $0x530] sm:$0xff] %vm3177_vm4, %v3087_v23  ;;  %v2705_v29 = vadd.f32 %v5282_v34, %v2442_v24  ;;  %v2833_v30 = vadd.f32 %v5282_v34, %v2570_v25  ;;  %v4030_v31 = vpop.f32.mrb[42].mxu0  ;;  %v4222_v32 = vpop.f32.mrb[42].mxu1 }
 0x134   :  { %v2962_v33 = vmax.f32 %v2706_v26, 0.0  ;;  %v3090_v35 = vmax.f32 %v2834_v27, 0.0  ;;  %v2445_v36 = vmul.f32 %v4030_v31, %v5263_v28  ;;  %v2573_v37 = vmul.f32 %v4222_v32, %v5263_v28  ;;  %v1326_v38 = vpop.f32.mrb[43].mxu0  ;;  %v1966_v39 = vpop.f32.mrb[43].mxu1 }
 0x135   :  { %v2961_v40 = vmax.f32 %v2705_v29, 0.0  ;;  %v3089_v41 = vmax.f32 %v2833_v30, 0.0  ;;  %v2444_v43 = vmul.f32 %v5933_v42, %v1326_v38  ;;  %v2572_v44 = vmul.f32 %v5933_v42, %v1966_v39 }
 0x136   :  { %3219 = vst.msk [vmem:[%s7000_s4 + $0x148] sm:$0xff] %vm3177_vm4, %v2962_v33  ;;  %3347 = vst.msk [vmem:[%s7000_s4 + $0x548] sm:$0xff] %vm3177_vm4, %v3090_v35  ;;  %v2708_v28 = vadd.f32 %v5282_v34, %v2445_v36  ;;  %v2836_v45 = vadd.f32 %v5282_v34, %v2573_v37 }
 0x137   :  { %3218 = vst.msk [vmem:[%s7000_s4 + $0x140] sm:$0xff] %vm3177_vm4, %v2961_v40  ;;  %3346 = vst.msk [vmem:[%s7000_s4 + $0x540] sm:$0xff] %vm3177_vm4, %v3089_v41  ;;  %v2707_v47 = vadd.f32 %v5958_v46, %v2444_v43  ;;  %v2835_v48 = vadd.f32 %v5958_v46, %v2572_v44  ;;  %v4033_v34 = vpop.f32.mrb[44].mxu0  ;;  %v4225_v49 = vpop.f32.mrb[44].mxu1 }
 0x138   :  { %v2964_v50 = vmax.f32 %v2708_v28, 0.0  ;;  %v3092_v51 = vmax.f32 %v2836_v45, 0.0  ;;  %v2447_v52 = vmul.f32 %v5933_v42, %v4033_v34  ;;  %v2575_v53 = vmul.f32 %v5933_v42, %v4225_v49  ;;  %v1336_v54 = vpop.f32.mrb[45].mxu0  ;;  %v1976_v55 = vpop.f32.mrb[45].mxu1 }
 0x139   :  { %v2963_v56 = vmax.f32 %v2707_v47, 0.0  ;;  %v3091_v57 = vmax.f32 %v2835_v48, 0.0  ;;  %v2446_v58 = vmul.f32 %v5933_v42, %v1336_v54  ;;  %v2574_v59 = vmul.f32 %v5933_v42, %v1976_v55 }
 0x13a   :  { %3221 = vst.msk [vmem:[%s7000_s4 + $0x158] sm:$0xff] %vm3177_vm4, %v2964_v50  ;;  %3349 = vst.msk [vmem:[%s7000_s4 + $0x558] sm:$0xff] %vm3177_vm4, %v3092_v51  ;;  %v2710_v60 = vadd.f32 %v5958_v46, %v2447_v52  ;;  %v2838_v61 = vadd.f32 %v5958_v46, %v2575_v53 }
 0x13b   :  { %3220 = vst.msk [vmem:[%s7000_s4 + $0x150] sm:$0xff] %vm3177_vm4, %v2963_v56  ;;  %3348 = vst.msk [vmem:[%s7000_s4 + $0x550] sm:$0xff] %vm3177_vm4, %v3091_v57  ;;  %v2709_v62 = vadd.f32 %v5958_v46, %v2446_v58  ;;  %v2837_v63 = vadd.f32 %v5958_v46, %v2574_v59  ;;  %v4036_v0 = vpop.f32.mrb[46].mxu0  ;;  %v4228_v1 = vpop.f32.mrb[46].mxu1 }
 0x13c   :  { %v2966_v2 = vmax.f32 %v2710_v60, 0.0  ;;  %v3094_v3 = vmax.f32 %v2838_v61, 0.0  ;;  %v2449_v4 = vmul.f32 %v5933_v42, %v4036_v0  ;;  %v2577_v5 = vmul.f32 %v5933_v42, %v4228_v1  ;;  %v1346_v6 = vpop.f32.mrb[47].mxu0  ;;  %v1986_v7 = vpop.f32.mrb[47].mxu1 }
 0x13d   :  { %v2965_v8 = vmax.f32 %v2709_v62, 0.0  ;;  %v3093_v9 = vmax.f32 %v2837_v63, 0.0  ;;  %v2448_v10 = vmul.f32 %v5933_v42, %v1346_v6  ;;  %v2576_v11 = vmul.f32 %v5933_v42, %v1986_v7 }
 0x13e   :  { %3223 = vst.msk [vmem:[%s7000_s4 + $0x168] sm:$0xff] %vm3177_vm4, %v2966_v2  ;;  %3351 = vst.msk [vmem:[%s7000_s4 + $0x568] sm:$0xff] %vm3177_vm4, %v3094_v3  ;;  %v2712_v12 = vadd.f32 %v5958_v46, %v2449_v4  ;;  %v2840_v13 = vadd.f32 %v5958_v46, %v2577_v5 }
 0x13f   :  { %3222 = vst.msk [vmem:[%s7000_s4 + $0x160] sm:$0xff] %vm3177_vm4, %v2965_v8  ;;  %3350 = vst.msk [vmem:[%s7000_s4 + $0x560] sm:$0xff] %vm3177_vm4, %v3093_v9  ;;  %v2711_v14 = vadd.f32 %v5958_v46, %v2448_v10  ;;  %v2839_v15 = vadd.f32 %v5958_v46, %v2576_v11  ;;  %v4039_v16 = vpop.f32.mrb[48].mxu0  ;;  %v4231_v17 = vpop.f32.mrb[48].mxu1 }
 0x140   :  { %v2968_v18 = vmax.f32 %v2712_v12, 0.0  ;;  %v3096_v19 = vmax.f32 %v2840_v13, 0.0  ;;  %v2451_v20 = vmul.f32 %v5933_v42, %v4039_v16  ;;  %v2579_v21 = vmul.f32 %v5933_v42, %v4231_v17  ;;  %v1356_v22 = vpop.f32.mrb[49].mxu0  ;;  %v1996_v23 = vpop.f32.mrb[49].mxu1 }
 0x141   :  { %v2967_v24 = vmax.f32 %v2711_v14, 0.0  ;;  %v3095_v25 = vmax.f32 %v2839_v15, 0.0  ;;  %v2450_v26 = vmul.f32 %v5933_v42, %v1356_v22  ;;  %v2578_v27 = vmul.f32 %v5933_v42, %v1996_v23 }
 0x142   :  { %3225 = vst.msk [vmem:[%s7000_s4 + $0x178] sm:$0xff] %vm3177_vm4, %v2968_v18  ;;  %3353 = vst.msk [vmem:[%s7000_s4 + $0x578] sm:$0xff] %vm3177_vm4, %v3096_v19  ;;  %v2714_v29 = vadd.f32 %v5958_v46, %v2451_v20  ;;  %v2842_v30 = vadd.f32 %v5958_v46, %v2579_v21 }
 0x143   :  { %3224 = vst.msk [vmem:[%s7000_s4 + $0x170] sm:$0xff] %vm3177_vm4, %v2967_v24  ;;  %3352 = vst.msk [vmem:[%s7000_s4 + $0x570] sm:$0xff] %vm3177_vm4, %v3095_v25  ;;  %v2713_v31 = vadd.f32 %v5958_v46, %v2450_v26  ;;  %v2841_v32 = vadd.f32 %v5958_v46, %v2578_v27  ;;  %v4042_v33 = vpop.f32.mrb[50].mxu0  ;;  %v4234_v35 = vpop.f32.mrb[50].mxu1 }
 0x144   :  { %v2970_v36 = vmax.f32 %v2714_v29, 0.0  ;;  %v3098_v37 = vmax.f32 %v2842_v30, 0.0  ;;  %v2453_v38 = vmul.f32 %v5933_v42, %v4042_v33  ;;  %v2581_v39 = vmul.f32 %v5933_v42, %v4234_v35  ;;  %v1366_v40 = vpop.f32.mrb[51].mxu0  ;;  %v2006_v41 = vpop.f32.mrb[51].mxu1 }
 0x145   :  { %v2969_v43 = vmax.f32 %v2713_v31, 0.0  ;;  %v3097_v44 = vmax.f32 %v2841_v32, 0.0  ;;  %v2452_v28 = vmul.f32 %v5933_v42, %v1366_v40  ;;  %v2580_v45 = vmul.f32 %v5933_v42, %v2006_v41 }
 0x146   :  { %3227 = vst.msk [vmem:[%s7000_s4 + $0x188] sm:$0xff] %vm3177_vm4, %v2970_v36  ;;  %3355 = vst.msk [vmem:[%s7000_s4 + $0x588] sm:$0xff] %vm3177_vm4, %v3098_v37  ;;  %v2716_v47 = vadd.f32 %v5958_v46, %v2453_v38  ;;  %v2844_v48 = vadd.f32 %v5958_v46, %v2581_v39 }
 0x147   :  { %3226 = vst.msk [vmem:[%s7000_s4 + $0x180] sm:$0xff] %vm3177_vm4, %v2969_v43  ;;  %3354 = vst.msk [vmem:[%s7000_s4 + $0x580] sm:$0xff] %vm3177_vm4, %v3097_v44  ;;  %v2715_v34 = vadd.f32 %v5958_v46, %v2452_v28  ;;  %v2843_v49 = vadd.f32 %v5958_v46, %v2580_v45  ;;  %v4045_v50 = vpop.f32.mrb[52].mxu0  ;;  %v4237_v51 = vpop.f32.mrb[52].mxu1 }
 0x148   :  { %v2972_v52 = vmax.f32 %v2716_v47, 0.0  ;;  %v3100_v53 = vmax.f32 %v2844_v48, 0.0  ;;  %v2455_v54 = vmul.f32 %v5933_v42, %v4045_v50  ;;  %v2583_v55 = vmul.f32 %v5933_v42, %v4237_v51  ;;  %v1376_v56 = vpop.f32.mrb[53].mxu0  ;;  %v2016_v57 = vpop.f32.mrb[53].mxu1 }
 0x149   :  { %v2971_v58 = vmax.f32 %v2715_v34, 0.0  ;;  %v3099_v59 = vmax.f32 %v2843_v49, 0.0  ;;  %v2454_v60 = vmul.f32 %v5933_v42, %v1376_v56  ;;  %v2582_v61 = vmul.f32 %v5933_v42, %v2016_v57 }
 0x14a   :  { %3229 = vst.msk [vmem:[%s7000_s4 + $0x198] sm:$0xff] %vm3177_vm4, %v2972_v52  ;;  %3357 = vst.msk [vmem:[%s7000_s4 + $0x598] sm:$0xff] %vm3177_vm4, %v3100_v53  ;;  %v2718_v62 = vadd.f32 %v5958_v46, %v2455_v54  ;;  %v2846_v63 = vadd.f32 %v5958_v46, %v2583_v55 }
 0x14b   :  { %3228 = vst.msk [vmem:[%s7000_s4 + $0x190] sm:$0xff] %vm3177_vm4, %v2971_v58  ;;  %3356 = vst.msk [vmem:[%s7000_s4 + $0x590] sm:$0xff] %vm3177_vm4, %v3099_v59  ;;  %v2717_v0 = vadd.f32 %v5958_v46, %v2454_v60  ;;  %v2845_v1 = vadd.f32 %v5958_v46, %v2582_v61  ;;  %v4048_v2 = vpop.f32.mrb[54].mxu0  ;;  %v4240_v3 = vpop.f32.mrb[54].mxu1 }
 0x14c   :  { %v2974_v4 = vmax.f32 %v2718_v62, 0.0  ;;  %v3102_v5 = vmax.f32 %v2846_v63, 0.0  ;;  %v2457_v6 = vmul.f32 %v5933_v42, %v4048_v2  ;;  %v2585_v7 = vmul.f32 %v5933_v42, %v4240_v3  ;;  %v1386_v8 = vpop.f32.mrb[55].mxu0  ;;  %v2026_v9 = vpop.f32.mrb[55].mxu1 }
 0x14d   :  { %v2973_v10 = vmax.f32 %v2717_v0, 0.0  ;;  %v3101_v11 = vmax.f32 %v2845_v1, 0.0  ;;  %v2456_v12 = vmul.f32 %v5933_v42, %v1386_v8  ;;  %v2584_v13 = vmul.f32 %v5933_v42, %v2026_v9 }
 0x14e   :  { %3231 = vst.msk [vmem:[%s7000_s4 + $0x1a8] sm:$0xff] %vm3177_vm4, %v2974_v4  ;;  %3359 = vst.msk [vmem:[%s7000_s4 + $0x5a8] sm:$0xff] %vm3177_vm4, %v3102_v5  ;;  %v2720_v14 = vadd.f32 %v5958_v46, %v2457_v6  ;;  %v2848_v15 = vadd.f32 %v5958_v46, %v2585_v7 }
 0x14f   :  { %3230 = vst.msk [vmem:[%s7000_s4 + $0x1a0] sm:$0xff] %vm3177_vm4, %v2973_v10  ;;  %3358 = vst.msk [vmem:[%s7000_s4 + $0x5a0] sm:$0xff] %vm3177_vm4, %v3101_v11  ;;  %v2719_v16 = vadd.f32 %v5958_v46, %v2456_v12  ;;  %v2847_v17 = vadd.f32 %v5958_v46, %v2584_v13  ;;  %v4051_v18 = vpop.f32.mrb[56].mxu0  ;;  %v4243_v19 = vpop.f32.mrb[56].mxu1 }
 0x150   :  { %v2976_v20 = vmax.f32 %v2720_v14, 0.0  ;;  %v3104_v21 = vmax.f32 %v2848_v15, 0.0  ;;  %v2459_v22 = vmul.f32 %v5933_v42, %v4051_v18  ;;  %v2587_v23 = vmul.f32 %v5933_v42, %v4243_v19  ;;  %v1396_v24 = vpop.f32.mrb[57].mxu0  ;;  %v2036_v25 = vpop.f32.mrb[57].mxu1 }
 0x151   :  { %v2975_v26 = vmax.f32 %v2719_v16, 0.0  ;;  %v3103_v27 = vmax.f32 %v2847_v17, 0.0  ;;  %v2458_v29 = vmul.f32 %v5933_v42, %v1396_v24  ;;  %v2586_v30 = vmul.f32 %v5933_v42, %v2036_v25 }
 0x152   :  { %3233 = vst.msk [vmem:[%s7000_s4 + $0x1b8] sm:$0xff] %vm3177_vm4, %v2976_v20  ;;  %3361 = vst.msk [vmem:[%s7000_s4 + $0x5b8] sm:$0xff] %vm3177_vm4, %v3104_v21  ;;  %v2722_v31 = vadd.f32 %v5958_v46, %v2459_v22  ;;  %v2850_v32 = vadd.f32 %v5958_v46, %v2587_v23 }
 0x153   :  { %3232 = vst.msk [vmem:[%s7000_s4 + $0x1b0] sm:$0xff] %vm3177_vm4, %v2975_v26  ;;  %3360 = vst.msk [vmem:[%s7000_s4 + $0x5b0] sm:$0xff] %vm3177_vm4, %v3103_v27  ;;  %v2721_v33 = vadd.f32 %v5958_v46, %v2458_v29  ;;  %v2849_v35 = vadd.f32 %v5958_v46, %v2586_v30  ;;  %v4054_v36 = vpop.f32.mrb[58].mxu0  ;;  %v4246_v37 = vpop.f32.mrb[58].mxu1 }
 0x154   :  { %v2978_v38 = vmax.f32 %v2722_v31, 0.0  ;;  %v3106_v39 = vmax.f32 %v2850_v32, 0.0  ;;  %v2461_v40 = vmul.f32 %v5933_v42, %v4054_v36  ;;  %v2589_v41 = vmul.f32 %v5933_v42, %v4246_v37  ;;  %v1406_v43 = vpop.f32.mrb[59].mxu0  ;;  %v2046_v44 = vpop.f32.mrb[59].mxu1 }
 0x155   :  { %v2977_v28 = vmax.f32 %v2721_v33, 0.0  ;;  %v3105_v45 = vmax.f32 %v2849_v35, 0.0  ;;  %v2460_v47 = vmul.f32 %v5933_v42, %v1406_v43  ;;  %v2588_v48 = vmul.f32 %v5933_v42, %v2046_v44 }
 0x156   :  { %3235 = vst.msk [vmem:[%s7000_s4 + $0x1c8] sm:$0xff] %vm3177_vm4, %v2978_v38  ;;  %3363 = vst.msk [vmem:[%s7000_s4 + $0x5c8] sm:$0xff] %vm3177_vm4, %v3106_v39  ;;  %v2724_v34 = vadd.f32 %v5958_v46, %v2461_v40  ;;  %v2852_v49 = vadd.f32 %v5958_v46, %v2589_v41 }
 0x157   :  { %3234 = vst.msk [vmem:[%s7000_s4 + $0x1c0] sm:$0xff] %vm3177_vm4, %v2977_v28  ;;  %3362 = vst.msk [vmem:[%s7000_s4 + $0x5c0] sm:$0xff] %vm3177_vm4, %v3105_v45  ;;  %v2723_v50 = vadd.f32 %v5958_v46, %v2460_v47  ;;  %v2851_v51 = vadd.f32 %v5958_v46, %v2588_v48  ;;  %v4057_v52 = vpop.f32.mrb[60].mxu0  ;;  %v4249_v53 = vpop.f32.mrb[60].mxu1 }
 0x158   :  { %v2980_v54 = vmax.f32 %v2724_v34, 0.0  ;;  %v3108_v55 = vmax.f32 %v2852_v49, 0.0  ;;  %v2463_v56 = vmul.f32 %v5933_v42, %v4057_v52  ;;  %v2591_v57 = vmul.f32 %v5933_v42, %v4249_v53  ;;  %v1416_v58 = vpop.f32.mrb[61].mxu0  ;;  %v2056_v59 = vpop.f32.mrb[61].mxu1 }
 0x159   :  { %v2979_v60 = vmax.f32 %v2723_v50, 0.0  ;;  %v3107_v61 = vmax.f32 %v2851_v51, 0.0  ;;  %v2462_v62 = vmul.f32 %v5933_v42, %v1416_v58  ;;  %v2590_v63 = vmul.f32 %v5933_v42, %v2056_v59 }
 0x15a   :  { %3237 = vst.msk [vmem:[%s7000_s4 + $0x1d8] sm:$0xff] %vm3177_vm4, %v2980_v54  ;;  %3365 = vst.msk [vmem:[%s7000_s4 + $0x5d8] sm:$0xff] %vm3177_vm4, %v3108_v55  ;;  %v2726_v0 = vadd.f32 %v5958_v46, %v2463_v56  ;;  %v2854_v1 = vadd.f32 %v5958_v46, %v2591_v57 }
 0x15b   :  { %3236 = vst.msk [vmem:[%s7000_s4 + $0x1d0] sm:$0xff] %vm3177_vm4, %v2979_v60  ;;  %3364 = vst.msk [vmem:[%s7000_s4 + $0x5d0] sm:$0xff] %vm3177_vm4, %v3107_v61  ;;  %v2725_v2 = vadd.f32 %v5958_v46, %v2462_v62  ;;  %v2853_v3 = vadd.f32 %v5958_v46, %v2590_v63  ;;  %v4060_v4 = vpop.f32.mrb[62].mxu0  ;;  %v4252_v5 = vpop.f32.mrb[62].mxu1 }
 0x15c   :  { %v2982_v6 = vmax.f32 %v2726_v0, 0.0  ;;  %v3110_v7 = vmax.f32 %v2854_v1, 0.0  ;;  %v2465_v8 = vmul.f32 %v5933_v42, %v4060_v4  ;;  %v2593_v9 = vmul.f32 %v5933_v42, %v4252_v5  ;;  %v1426_v10 = vpop.f32.mrb[63].mxu0  ;;  %v2066_v11 = vpop.f32.mrb[63].mxu1 }
 0x15d   :  { %v2981_v12 = vmax.f32 %v2725_v2, 0.0  ;;  %v3109_v13 = vmax.f32 %v2853_v3, 0.0  ;;  %v2464_v14 = vmul.f32 %v5933_v42, %v1426_v10  ;;  %v2592_v15 = vmul.f32 %v5933_v42, %v2066_v11 }
 0x15e   :  { %3239 = vst.msk [vmem:[%s7000_s4 + $0x1e8] sm:$0xff] %vm3177_vm4, %v2982_v6  ;;  %3367 = vst.msk [vmem:[%s7000_s4 + $0x5e8] sm:$0xff] %vm3177_vm4, %v3110_v7  ;;  %v2728_v16 = vadd.f32 %v5958_v46, %v2465_v8  ;;  %v2856_v17 = vadd.f32 %v5958_v46, %v2593_v9 }
 0x15f   :  { %3238 = vst.msk [vmem:[%s7000_s4 + $0x1e0] sm:$0xff] %vm3177_vm4, %v2981_v12  ;;  %3366 = vst.msk [vmem:[%s7000_s4 + $0x5e0] sm:$0xff] %vm3177_vm4, %v3109_v13  ;;  %v2727_v18 = vadd.f32 %v5958_v46, %v2464_v14  ;;  %v2855_v19 = vadd.f32 %v5958_v46, %v2592_v15  ;;  %v4063_v20 = vpop.f32.mrb[64].mxu0  ;;  %v4255_v21 = vpop.f32.mrb[64].mxu1 }
 0x160   :  { %v2984_v22 = vmax.f32 %v2728_v16, 0.0  ;;  %v3112_v23 = vmax.f32 %v2856_v17, 0.0  ;;  %v2467_v24 = vmul.f32 %v5933_v42, %v4063_v20  ;;  %v2595_v25 = vmul.f32 %v5933_v42, %v4255_v21  ;;  %v1436_v26 = vpop.f32.mrb[65].mxu0  ;;  %v2076_v27 = vpop.f32.mrb[65].mxu1 }
 0x161   :  { %v2983_v29 = vmax.f32 %v2727_v18, 0.0  ;;  %v3111_v30 = vmax.f32 %v2855_v19, 0.0  ;;  %v2466_v31 = vmul.f32 %v5933_v42, %v1436_v26  ;;  %v2594_v32 = vmul.f32 %v5933_v42, %v2076_v27 }
 0x162   :  { %3241 = vst.msk [vmem:[%s7000_s4 + $0x1f8] sm:$0xff] %vm3177_vm4, %v2984_v22  ;;  %3369 = vst.msk [vmem:[%s7000_s4 + $0x5f8] sm:$0xff] %vm3177_vm4, %v3112_v23  ;;  %v2730_v33 = vadd.f32 %v5958_v46, %v2467_v24  ;;  %v2858_v35 = vadd.f32 %v5958_v46, %v2595_v25 }
 0x163   :  { %3240 = vst.msk [vmem:[%s7000_s4 + $0x1f0] sm:$0xff] %vm3177_vm4, %v2983_v29  ;;  %3368 = vst.msk [vmem:[%s7000_s4 + $0x5f0] sm:$0xff] %vm3177_vm4, %v3111_v30  ;;  %v2729_v36 = vadd.f32 %v5958_v46, %v2466_v31  ;;  %v2857_v37 = vadd.f32 %v5958_v46, %v2594_v32  ;;  %v4066_v38 = vpop.f32.mrb[66].mxu0  ;;  %v4258_v39 = vpop.f32.mrb[66].mxu1 }
 0x164   :  { %v2986_v40 = vmax.f32 %v2730_v33, 0.0  ;;  %v3114_v41 = vmax.f32 %v2858_v35, 0.0  ;;  %v2469_v43 = vmul.f32 %v5933_v42, %v4066_v38  ;;  %v2597_v44 = vmul.f32 %v5933_v42, %v4258_v39  ;;  %v1446_v28 = vpop.f32.mrb[67].mxu0  ;;  %v2086_v45 = vpop.f32.mrb[67].mxu1 }
 0x165   :  { %v2985_v47 = vmax.f32 %v2729_v36, 0.0  ;;  %v3113_v48 = vmax.f32 %v2857_v37, 0.0  ;;  %v2468_v34 = vmul.f32 %v5933_v42, %v1446_v28  ;;  %v2596_v49 = vmul.f32 %v5933_v42, %v2086_v45 }
 0x166   :  { %3243 = vst.msk [vmem:[%s7000_s4 + $0x208] sm:$0xff] %vm3177_vm4, %v2986_v40  ;;  %3371 = vst.msk [vmem:[%s7000_s4 + $0x608] sm:$0xff] %vm3177_vm4, %v3114_v41  ;;  %v2732_v50 = vadd.f32 %v5958_v46, %v2469_v43  ;;  %v2860_v51 = vadd.f32 %v5958_v46, %v2597_v44 }
 0x167   :  { %3242 = vst.msk [vmem:[%s7000_s4 + $0x200] sm:$0xff] %vm3177_vm4, %v2985_v47  ;;  %3370 = vst.msk [vmem:[%s7000_s4 + $0x600] sm:$0xff] %vm3177_vm4, %v3113_v48  ;;  %v2731_v52 = vadd.f32 %v5958_v46, %v2468_v34  ;;  %v2859_v53 = vadd.f32 %v5958_v46, %v2596_v49  ;;  %v4069_v54 = vpop.f32.mrb[68].mxu0  ;;  %v4261_v55 = vpop.f32.mrb[68].mxu1 }
 0x168   :  { %v2988_v56 = vmax.f32 %v2732_v50, 0.0  ;;  %v3116_v57 = vmax.f32 %v2860_v51, 0.0  ;;  %v2471_v58 = vmul.f32 %v5933_v42, %v4069_v54  ;;  %v2599_v59 = vmul.f32 %v5933_v42, %v4261_v55  ;;  %v1456_v60 = vpop.f32.mrb[69].mxu0  ;;  %v2096_v61 = vpop.f32.mrb[69].mxu1 }
 0x169   :  { %v2987_v62 = vmax.f32 %v2731_v52, 0.0  ;;  %v3115_v63 = vmax.f32 %v2859_v53, 0.0  ;;  %v2470_v0 = vmul.f32 %v5933_v42, %v1456_v60  ;;  %v2598_v1 = vmul.f32 %v5933_v42, %v2096_v61 }
 0x16a   :  { %3245 = vst.msk [vmem:[%s7000_s4 + $0x218] sm:$0xff] %vm3177_vm4, %v2988_v56  ;;  %3373 = vst.msk [vmem:[%s7000_s4 + $0x618] sm:$0xff] %vm3177_vm4, %v3116_v57  ;;  %v2734_v2 = vadd.f32 %v5958_v46, %v2471_v58  ;;  %v2862_v3 = vadd.f32 %v5958_v46, %v2599_v59 }
 0x16b   :  { %3244 = vst.msk [vmem:[%s7000_s4 + $0x210] sm:$0xff] %vm3177_vm4, %v2987_v62  ;;  %3372 = vst.msk [vmem:[%s7000_s4 + $0x610] sm:$0xff] %vm3177_vm4, %v3115_v63  ;;  %v2733_v4 = vadd.f32 %v5958_v46, %v2470_v0  ;;  %v2861_v5 = vadd.f32 %v5958_v46, %v2598_v1  ;;  %v4072_v6 = vpop.f32.mrb[70].mxu0  ;;  %v4264_v7 = vpop.f32.mrb[70].mxu1 }
 0x16c   :  { %v2990_v8 = vmax.f32 %v2734_v2, 0.0  ;;  %v3118_v9 = vmax.f32 %v2862_v3, 0.0  ;;  %v2473_v10 = vmul.f32 %v5933_v42, %v4072_v6  ;;  %v2601_v11 = vmul.f32 %v5933_v42, %v4264_v7  ;;  %v1466_v12 = vpop.f32.mrb[71].mxu0  ;;  %v2106_v13 = vpop.f32.mrb[71].mxu1 }
 0x16d   :  { %v2989_v14 = vmax.f32 %v2733_v4, 0.0  ;;  %v3117_v15 = vmax.f32 %v2861_v5, 0.0  ;;  %v2472_v16 = vmul.f32 %v5933_v42, %v1466_v12  ;;  %v2600_v17 = vmul.f32 %v5933_v42, %v2106_v13 }
 0x16e   :  { %3247 = vst.msk [vmem:[%s7000_s4 + $0x228] sm:$0xff] %vm3177_vm4, %v2990_v8  ;;  %3375 = vst.msk [vmem:[%s7000_s4 + $0x628] sm:$0xff] %vm3177_vm4, %v3118_v9  ;;  %v2736_v18 = vadd.f32 %v5958_v46, %v2473_v10  ;;  %v2864_v19 = vadd.f32 %v5958_v46, %v2601_v11 }
 0x16f   :  { %3246 = vst.msk [vmem:[%s7000_s4 + $0x220] sm:$0xff] %vm3177_vm4, %v2989_v14  ;;  %3374 = vst.msk [vmem:[%s7000_s4 + $0x620] sm:$0xff] %vm3177_vm4, %v3117_v15  ;;  %v2735_v20 = vadd.f32 %v5958_v46, %v2472_v16  ;;  %v2863_v21 = vadd.f32 %v5958_v46, %v2600_v17  ;;  %v4075_v22 = vpop.f32.mrb[72].mxu0  ;;  %v4267_v23 = vpop.f32.mrb[72].mxu1 }
 0x170   :  { %v2992_v24 = vmax.f32 %v2736_v18, 0.0  ;;  %v3120_v25 = vmax.f32 %v2864_v19, 0.0  ;;  %v2475_v26 = vmul.f32 %v5933_v42, %v4075_v22  ;;  %v2603_v27 = vmul.f32 %v5933_v42, %v4267_v23  ;;  %v1476_v29 = vpop.f32.mrb[73].mxu0  ;;  %v2116_v30 = vpop.f32.mrb[73].mxu1 }
 0x171   :  { %v2991_v31 = vmax.f32 %v2735_v20, 0.0  ;;  %v3119_v32 = vmax.f32 %v2863_v21, 0.0  ;;  %v2474_v33 = vmul.f32 %v5933_v42, %v1476_v29  ;;  %v2602_v35 = vmul.f32 %v5933_v42, %v2116_v30 }
 0x172   :  { %3249 = vst.msk [vmem:[%s7000_s4 + $0x238] sm:$0xff] %vm3177_vm4, %v2992_v24  ;;  %3377 = vst.msk [vmem:[%s7000_s4 + $0x638] sm:$0xff] %vm3177_vm4, %v3120_v25  ;;  %v2738_v36 = vadd.f32 %v5958_v46, %v2475_v26  ;;  %v2866_v37 = vadd.f32 %v5958_v46, %v2603_v27 }
 0x173   :  { %3248 = vst.msk [vmem:[%s7000_s4 + $0x230] sm:$0xff] %vm3177_vm4, %v2991_v31  ;;  %3376 = vst.msk [vmem:[%s7000_s4 + $0x630] sm:$0xff] %vm3177_vm4, %v3119_v32  ;;  %v2737_v38 = vadd.f32 %v5958_v46, %v2474_v33  ;;  %v2865_v39 = vadd.f32 %v5958_v46, %v2602_v35  ;;  %v4078_v40 = vpop.f32.mrb[74].mxu0  ;;  %v4270_v41 = vpop.f32.mrb[74].mxu1 }
 0x174   :  { %v2994_v43 = vmax.f32 %v2738_v36, 0.0  ;;  %v3122_v44 = vmax.f32 %v2866_v37, 0.0  ;;  %v2477_v28 = vmul.f32 %v5933_v42, %v4078_v40  ;;  %v2605_v45 = vmul.f32 %v5933_v42, %v4270_v41  ;;  %v1486_v47 = vpop.f32.mrb[75].mxu0  ;;  %v2126_v48 = vpop.f32.mrb[75].mxu1 }
 0x175   :  { %v2993_v34 = vmax.f32 %v2737_v38, 0.0  ;;  %v3121_v49 = vmax.f32 %v2865_v39, 0.0  ;;  %v2476_v50 = vmul.f32 %v5933_v42, %v1486_v47  ;;  %v2604_v51 = vmul.f32 %v5933_v42, %v2126_v48 }
 0x176   :  { %3251 = vst.msk [vmem:[%s7000_s4 + $0x248] sm:$0xff] %vm3177_vm4, %v2994_v43  ;;  %3379 = vst.msk [vmem:[%s7000_s4 + $0x648] sm:$0xff] %vm3177_vm4, %v3122_v44  ;;  %v2740_v52 = vadd.f32 %v5958_v46, %v2477_v28  ;;  %v2868_v53 = vadd.f32 %v5958_v46, %v2605_v45 }
 0x177   :  { %3250 = vst.msk [vmem:[%s7000_s4 + $0x240] sm:$0xff] %vm3177_vm4, %v2993_v34  ;;  %3378 = vst.msk [vmem:[%s7000_s4 + $0x640] sm:$0xff] %vm3177_vm4, %v3121_v49  ;;  %v2739_v54 = vadd.f32 %v5958_v46, %v2476_v50  ;;  %v2867_v55 = vadd.f32 %v5958_v46, %v2604_v51  ;;  %v4081_v56 = vpop.f32.mrb[76].mxu0  ;;  %v4273_v57 = vpop.f32.mrb[76].mxu1 }
 0x178   :  { %v2996_v58 = vmax.f32 %v2740_v52, 0.0  ;;  %v3124_v59 = vmax.f32 %v2868_v53, 0.0  ;;  %v2479_v60 = vmul.f32 %v5933_v42, %v4081_v56  ;;  %v2607_v61 = vmul.f32 %v5933_v42, %v4273_v57  ;;  %v1496_v62 = vpop.f32.mrb[77].mxu0  ;;  %v2136_v63 = vpop.f32.mrb[77].mxu1 }
 0x179   :  { %v2995_v0 = vmax.f32 %v2739_v54, 0.0  ;;  %v3123_v1 = vmax.f32 %v2867_v55, 0.0  ;;  %v2478_v2 = vmul.f32 %v5933_v42, %v1496_v62  ;;  %v2606_v3 = vmul.f32 %v5933_v42, %v2136_v63 }
 0x17a   :  { %3253 = vst.msk [vmem:[%s7000_s4 + $0x258] sm:$0xff] %vm3177_vm4, %v2996_v58  ;;  %3381 = vst.msk [vmem:[%s7000_s4 + $0x658] sm:$0xff] %vm3177_vm4, %v3124_v59  ;;  %v2742_v4 = vadd.f32 %v5958_v46, %v2479_v60  ;;  %v2870_v5 = vadd.f32 %v5958_v46, %v2607_v61 }
 0x17b   :  { %3252 = vst.msk [vmem:[%s7000_s4 + $0x250] sm:$0xff] %vm3177_vm4, %v2995_v0  ;;  %3380 = vst.msk [vmem:[%s7000_s4 + $0x650] sm:$0xff] %vm3177_vm4, %v3123_v1  ;;  %v2741_v6 = vadd.f32 %v5958_v46, %v2478_v2  ;;  %v2869_v7 = vadd.f32 %v5958_v46, %v2606_v3  ;;  %v4084_v8 = vpop.f32.mrb[78].mxu0  ;;  %v4276_v9 = vpop.f32.mrb[78].mxu1 }
 0x17c   :  { %v2998_v10 = vmax.f32 %v2742_v4, 0.0  ;;  %v3126_v11 = vmax.f32 %v2870_v5, 0.0  ;;  %v2481_v12 = vmul.f32 %v5933_v42, %v4084_v8  ;;  %v2609_v13 = vmul.f32 %v5933_v42, %v4276_v9  ;;  %v1506_v14 = vpop.f32.mrb[79].mxu0  ;;  %v2146_v15 = vpop.f32.mrb[79].mxu1 }
 0x17d   :  { %v2997_v16 = vmax.f32 %v2741_v6, 0.0  ;;  %v3125_v17 = vmax.f32 %v2869_v7, 0.0  ;;  %v2480_v18 = vmul.f32 %v5933_v42, %v1506_v14  ;;  %v2608_v19 = vmul.f32 %v5933_v42, %v2146_v15 }
 0x17e   :  { %3255 = vst.msk [vmem:[%s7000_s4 + $0x268] sm:$0xff] %vm3177_vm4, %v2998_v10  ;;  %3383 = vst.msk [vmem:[%s7000_s4 + $0x668] sm:$0xff] %vm3177_vm4, %v3126_v11  ;;  %v2744_v20 = vadd.f32 %v5958_v46, %v2481_v12  ;;  %v2872_v21 = vadd.f32 %v5958_v46, %v2609_v13 }
 0x17f   :  { %3254 = vst.msk [vmem:[%s7000_s4 + $0x260] sm:$0xff] %vm3177_vm4, %v2997_v16  ;;  %3382 = vst.msk [vmem:[%s7000_s4 + $0x660] sm:$0xff] %vm3177_vm4, %v3125_v17  ;;  %v2743_v22 = vadd.f32 %v5958_v46, %v2480_v18  ;;  %v2871_v23 = vadd.f32 %v5958_v46, %v2608_v19  ;;  %v4087_v24 = vpop.f32.mrb[80].mxu0  ;;  %v4279_v25 = vpop.f32.mrb[80].mxu1 }
 0x180   :  { %v3000_v26 = vmax.f32 %v2744_v20, 0.0  ;;  %v3128_v27 = vmax.f32 %v2872_v21, 0.0  ;;  %v2483_v29 = vmul.f32 %v5933_v42, %v4087_v24  ;;  %v2611_v30 = vmul.f32 %v5933_v42, %v4279_v25  ;;  %v1516_v31 = vpop.f32.mrb[81].mxu0  ;;  %v2156_v32 = vpop.f32.mrb[81].mxu1 }
 0x181   :  { %v2999_v33 = vmax.f32 %v2743_v22, 0.0  ;;  %v3127_v35 = vmax.f32 %v2871_v23, 0.0  ;;  %v2482_v36 = vmul.f32 %v5933_v42, %v1516_v31  ;;  %v2610_v37 = vmul.f32 %v5933_v42, %v2156_v32 }
 0x182   :  { %3257 = vst.msk [vmem:[%s7000_s4 + $0x278] sm:$0xff] %vm3177_vm4, %v3000_v26  ;;  %3385 = vst.msk [vmem:[%s7000_s4 + $0x678] sm:$0xff] %vm3177_vm4, %v3128_v27  ;;  %v2746_v38 = vadd.f32 %v5958_v46, %v2483_v29  ;;  %v2874_v39 = vadd.f32 %v5958_v46, %v2611_v30 }
 0x183   :  { %3256 = vst.msk [vmem:[%s7000_s4 + $0x270] sm:$0xff] %vm3177_vm4, %v2999_v33  ;;  %3384 = vst.msk [vmem:[%s7000_s4 + $0x670] sm:$0xff] %vm3177_vm4, %v3127_v35  ;;  %v2745_v40 = vadd.f32 %v5958_v46, %v2482_v36  ;;  %v2873_v41 = vadd.f32 %v5958_v46, %v2610_v37  ;;  %v4090_v43 = vpop.f32.mrb[82].mxu0  ;;  %v4282_v44 = vpop.f32.mrb[82].mxu1 }
 0x184   :  { %v3002_v28 = vmax.f32 %v2746_v38, 0.0  ;;  %v3130_v45 = vmax.f32 %v2874_v39, 0.0  ;;  %v2485_v47 = vmul.f32 %v5933_v42, %v4090_v43  ;;  %v2613_v48 = vmul.f32 %v5933_v42, %v4282_v44  ;;  %v1526_v34 = vpop.f32.mrb[83].mxu0  ;;  %v2166_v49 = vpop.f32.mrb[83].mxu1 }
 0x185   :  { %v3001_v50 = vmax.f32 %v2745_v40, 0.0  ;;  %v3129_v51 = vmax.f32 %v2873_v41, 0.0  ;;  %v2484_v52 = vmul.f32 %v5933_v42, %v1526_v34  ;;  %v2612_v53 = vmul.f32 %v5933_v42, %v2166_v49 }
 0x186   :  { %3259 = vst.msk [vmem:[%s7000_s4 + $0x288] sm:$0xff] %vm3177_vm4, %v3002_v28  ;;  %3387 = vst.msk [vmem:[%s7000_s4 + $0x688] sm:$0xff] %vm3177_vm4, %v3130_v45  ;;  %v2748_v54 = vadd.f32 %v5958_v46, %v2485_v47  ;;  %v2876_v55 = vadd.f32 %v5958_v46, %v2613_v48 }
 0x187   :  { %3258 = vst.msk [vmem:[%s7000_s4 + $0x280] sm:$0xff] %vm3177_vm4, %v3001_v50  ;;  %3386 = vst.msk [vmem:[%s7000_s4 + $0x680] sm:$0xff] %vm3177_vm4, %v3129_v51  ;;  %v2747_v56 = vadd.f32 %v5958_v46, %v2484_v52  ;;  %v2875_v57 = vadd.f32 %v5958_v46, %v2612_v53  ;;  %v4093_v58 = vpop.f32.mrb[84].mxu0  ;;  %v4285_v59 = vpop.f32.mrb[84].mxu1 }
 0x188   :  { %v3004_v60 = vmax.f32 %v2748_v54, 0.0  ;;  %v3132_v61 = vmax.f32 %v2876_v55, 0.0  ;;  %v2487_v62 = vmul.f32 %v5933_v42, %v4093_v58  ;;  %v2615_v63 = vmul.f32 %v5933_v42, %v4285_v59  ;;  %v1536_v0 = vpop.f32.mrb[85].mxu0  ;;  %v2176_v1 = vpop.f32.mrb[85].mxu1 }
 0x189   :  { %v3003_v2 = vmax.f32 %v2747_v56, 0.0  ;;  %v3131_v3 = vmax.f32 %v2875_v57, 0.0  ;;  %v2486_v4 = vmul.f32 %v5933_v42, %v1536_v0  ;;  %v2614_v5 = vmul.f32 %v5933_v42, %v2176_v1 }
 0x18a   :  { %3261 = vst.msk [vmem:[%s7000_s4 + $0x298] sm:$0xff] %vm3177_vm4, %v3004_v60  ;;  %3389 = vst.msk [vmem:[%s7000_s4 + $0x698] sm:$0xff] %vm3177_vm4, %v3132_v61  ;;  %v2750_v6 = vadd.f32 %v5958_v46, %v2487_v62  ;;  %v2878_v7 = vadd.f32 %v5958_v46, %v2615_v63 }
 0x18b   :  { %3260 = vst.msk [vmem:[%s7000_s4 + $0x290] sm:$0xff] %vm3177_vm4, %v3003_v2  ;;  %3388 = vst.msk [vmem:[%s7000_s4 + $0x690] sm:$0xff] %vm3177_vm4, %v3131_v3  ;;  %v2749_v8 = vadd.f32 %v5958_v46, %v2486_v4  ;;  %v2877_v9 = vadd.f32 %v5958_v46, %v2614_v5  ;;  %v4096_v10 = vpop.f32.mrb[86].mxu0  ;;  %v4288_v11 = vpop.f32.mrb[86].mxu1 }
 0x18c   :  { %v3006_v12 = vmax.f32 %v2750_v6, 0.0  ;;  %v3134_v13 = vmax.f32 %v2878_v7, 0.0  ;;  %v2489_v14 = vmul.f32 %v5933_v42, %v4096_v10  ;;  %v2617_v15 = vmul.f32 %v5933_v42, %v4288_v11  ;;  %v1546_v16 = vpop.f32.mrb[87].mxu0  ;;  %v2186_v17 = vpop.f32.mrb[87].mxu1 }
 0x18d   :  { %v3005_v18 = vmax.f32 %v2749_v8, 0.0  ;;  %v3133_v19 = vmax.f32 %v2877_v9, 0.0  ;;  %v2488_v20 = vmul.f32 %v5933_v42, %v1546_v16  ;;  %v2616_v21 = vmul.f32 %v5933_v42, %v2186_v17 }
 0x18e   :  { %3263 = vst.msk [vmem:[%s7000_s4 + $0x2a8] sm:$0xff] %vm3177_vm4, %v3006_v12  ;;  %3391 = vst.msk [vmem:[%s7000_s4 + $0x6a8] sm:$0xff] %vm3177_vm4, %v3134_v13  ;;  %v2752_v22 = vadd.f32 %v5958_v46, %v2489_v14  ;;  %v2880_v23 = vadd.f32 %v5958_v46, %v2617_v15  ;;  %v6565_v15 = vld [vmem:[%s6998_s2] ss:$0 sm:$0xff] }
 0x18f   :  { %3262 = vst.msk [vmem:[%s7000_s4 + $0x2a0] sm:$0xff] %vm3177_vm4, %v3005_v18  ;;  %3390 = vst.msk [vmem:[%s7000_s4 + $0x6a0] sm:$0xff] %vm3177_vm4, %v3133_v19  ;;  %v2751_v24 = vadd.f32 %v5958_v46, %v2488_v20  ;;  %v2879_v25 = vadd.f32 %v5958_v46, %v2616_v21  ;;  %v4099_v26 = vpop.f32.mrb[88].mxu0  ;;  %v4291_v27 = vpop.f32.mrb[88].mxu1 }
 0x190   :  { %v3008_v29 = vmax.f32 %v2752_v22, 0.0  ;;  %v3136_v30 = vmax.f32 %v2880_v23, 0.0  ;;  %v2491_v31 = vmul.f32 %v5933_v42, %v4099_v26  ;;  %v2619_v32 = vmul.f32 %v5933_v42, %v4291_v27  ;;  %v1556_v33 = vpop.f32.mrb[89].mxu0  ;;  %v2196_v35 = vpop.f32.mrb[89].mxu1  ;;  %v6582_v23 = vld [vmem:[%s6999_s3] ss:$0 sm:$0xff] }
 0x191   :  { %v3007_v36 = vmax.f32 %v2751_v24, 0.0  ;;  %v3135_v37 = vmax.f32 %v2879_v25, 0.0  ;;  %v2490_v38 = vmul.f32 %v5933_v42, %v1556_v33  ;;  %v2618_v39 = vmul.f32 %v5933_v42, %v2196_v35 }
 0x192   :  { %3265 = vst.msk [vmem:[%s7000_s4 + $0x2b8] sm:$0xff] %vm3177_vm4, %v3008_v29  ;;  %3393 = vst.msk [vmem:[%s7000_s4 + $0x6b8] sm:$0xff] %vm3177_vm4, %v3136_v30  ;;  %v2754_v40 = vadd.f32 %v5958_v46, %v2491_v31  ;;  %v2882_v41 = vadd.f32 %v5958_v46, %v2619_v32 }
 0x193   :  { %3264 = vst.msk [vmem:[%s7000_s4 + $0x2b0] sm:$0xff] %vm3177_vm4, %v3007_v36  ;;  %3392 = vst.msk [vmem:[%s7000_s4 + $0x6b0] sm:$0xff] %vm3177_vm4, %v3135_v37  ;;  %v2753_v43 = vadd.f32 %v5958_v46, %v2490_v38  ;;  %v2881_v44 = vadd.f32 %v5958_v46, %v2618_v39  ;;  %v4102_v28 = vpop.f32.mrb[90].mxu0  ;;  %v4294_v45 = vpop.f32.mrb[90].mxu1 }
 0x194   :  { %v3010_v47 = vmax.f32 %v2754_v40, 0.0  ;;  %v3138_v48 = vmax.f32 %v2882_v41, 0.0  ;;  %v2493_v34 = vmul.f32 %v5933_v42, %v4102_v28  ;;  %v2621_v49 = vmul.f32 %v5933_v42, %v4294_v45  ;;  %v1566_v50 = vpop.f32.mrb[91].mxu0  ;;  %v2206_v51 = vpop.f32.mrb[91].mxu1 }
 0x195   :  { %v3009_v52 = vmax.f32 %v2753_v43, 0.0  ;;  %v3137_v53 = vmax.f32 %v2881_v44, 0.0  ;;  %v2492_v54 = vmul.f32 %v5933_v42, %v1566_v50  ;;  %v2620_v55 = vmul.f32 %v5933_v42, %v2206_v51 }
 0x196   :  { %3267 = vst.msk [vmem:[%s7000_s4 + $0x2c8] sm:$0xff] %vm3177_vm4, %v3010_v47  ;;  %3395 = vst.msk [vmem:[%s7000_s4 + $0x6c8] sm:$0xff] %vm3177_vm4, %v3138_v48  ;;  %v2756_v56 = vadd.f32 %v5958_v46, %v2493_v34  ;;  %v2884_v57 = vadd.f32 %v5958_v46, %v2621_v49 }
 0x197   :  { %3266 = vst.msk [vmem:[%s7000_s4 + $0x2c0] sm:$0xff] %vm3177_vm4, %v3009_v52  ;;  %3394 = vst.msk [vmem:[%s7000_s4 + $0x6c0] sm:$0xff] %vm3177_vm4, %v3137_v53  ;;  %v2755_v58 = vadd.f32 %v5958_v46, %v2492_v54  ;;  %v2883_v59 = vadd.f32 %v5958_v46, %v2620_v55  ;;  %v4105_v60 = vpop.f32.mrb[92].mxu0  ;;  %v4297_v61 = vpop.f32.mrb[92].mxu1 }
 0x198   :  { %v3012_v62 = vmax.f32 %v2756_v56, 0.0  ;;  %v3140_v63 = vmax.f32 %v2884_v57, 0.0  ;;  %v2495_v0 = vmul.f32 %v5933_v42, %v4105_v60  ;;  %v2623_v1 = vmul.f32 %v5933_v42, %v4297_v61  ;;  %v1576_v2 = vpop.f32.mrb[93].mxu0  ;;  %v2216_v3 = vpop.f32.mrb[93].mxu1 }
 0x199   :  { %v3011_v4 = vmax.f32 %v2755_v58, 0.0  ;;  %v3139_v5 = vmax.f32 %v2883_v59, 0.0  ;;  %v2494_v6 = vmul.f32 %v5933_v42, %v1576_v2  ;;  %v2622_v7 = vmul.f32 %v5933_v42, %v2216_v3 }
 0x19a   :  { %3269 = vst.msk [vmem:[%s7000_s4 + $0x2d8] sm:$0xff] %vm3177_vm4, %v3012_v62  ;;  %3397 = vst.msk [vmem:[%s7000_s4 + $0x6d8] sm:$0xff] %vm3177_vm4, %v3140_v63  ;;  %v2758_v8 = vadd.f32 %v5958_v46, %v2495_v0  ;;  %v2886_v9 = vadd.f32 %v5958_v46, %v2623_v1 }
 0x19b   :  { %3268 = vst.msk [vmem:[%s7000_s4 + $0x2d0] sm:$0xff] %vm3177_vm4, %v3011_v4  ;;  %3396 = vst.msk [vmem:[%s7000_s4 + $0x6d0] sm:$0xff] %vm3177_vm4, %v3139_v5  ;;  %v2757_v42 = vadd.f32 %v5958_v46, %v2494_v6  ;;  %v2885_v10 = vadd.f32 %v5958_v46, %v2622_v7  ;;  %v4108_v11 = vpop.f32.mrb[94].mxu0  ;;  %v4300_v12 = vpop.f32.mrb[94].mxu1 }
 0x19c   :  { %v3014_v13 = vmax.f32 %v2758_v8, 0.0  ;;  %v3142_v14 = vmax.f32 %v2886_v9, 0.0  ;;  %v2497_v16 = vmul.f32 %v6565_v15, %v4108_v11  ;;  %v2625_v17 = vmul.f32 %v6565_v15, %v4300_v12  ;;  %v1586_v18 = vpop.f32.mrb[95].mxu0  ;;  %v2226_v19 = vpop.f32.mrb[95].mxu1 }
 0x19d   :  { %v3013_v20 = vmax.f32 %v2757_v42, 0.0  ;;  %v3141_v21 = vmax.f32 %v2885_v10, 0.0  ;;  %v2496_v22 = vmul.f32 %v6565_v15, %v1586_v18  ;;  %v2624_v46 = vmul.f32 %v6565_v15, %v2226_v19 }
 0x19e   :  { %3271 = vst.msk [vmem:[%s7000_s4 + $0x2e8] sm:$0xff] %vm3177_vm4, %v3014_v13  ;;  %3399 = vst.msk [vmem:[%s7000_s4 + $0x6e8] sm:$0xff] %vm3177_vm4, %v3142_v14  ;;  %v2760_v24 = vadd.f32 %v6582_v23, %v2497_v16  ;;  %v2888_v25 = vadd.f32 %v6582_v23, %v2625_v17 }
 0x19f   :  { %3270 = vst.msk [vmem:[%s7000_s4 + $0x2e0] sm:$0xff] %vm3177_vm4, %v3013_v20  ;;  %3398 = vst.msk [vmem:[%s7000_s4 + $0x6e0] sm:$0xff] %vm3177_vm4, %v3141_v21  ;;  %v2759_v26 = vadd.f32 %v6582_v23, %v2496_v22  ;;  %v2887_v27 = vadd.f32 %v6582_v23, %v2624_v46  ;;  %v4111_v29 = vpop.f32.mrb[96].mxu0  ;;  %v4303_v30 = vpop.f32.mrb[96].mxu1 }
 0x1a0   :  { %v3016_v31 = vmax.f32 %v2760_v24, 0.0  ;;  %v3144_v32 = vmax.f32 %v2888_v25, 0.0  ;;  %v2499_v33 = vmul.f32 %v6565_v15, %v4111_v29  ;;  %v2627_v35 = vmul.f32 %v6565_v15, %v4303_v30  ;;  %v1596_v36 = vpop.f32.mrb[97].mxu0  ;;  %v2236_v37 = vpop.f32.mrb[97].mxu1 }
 0x1a1   :  { %v3015_v38 = vmax.f32 %v2759_v26, 0.0  ;;  %v3143_v39 = vmax.f32 %v2887_v27, 0.0  ;;  %v2498_v40 = vmul.f32 %v6565_v15, %v1596_v36  ;;  %v2626_v41 = vmul.f32 %v6565_v15, %v2236_v37 }
 0x1a2   :  { %3273 = vst.msk [vmem:[%s7000_s4 + $0x2f8] sm:$0xff] %vm3177_vm4, %v3016_v31  ;;  %3401 = vst.msk [vmem:[%s7000_s4 + $0x6f8] sm:$0xff] %vm3177_vm4, %v3144_v32  ;;  %v2762_v43 = vadd.f32 %v6582_v23, %v2499_v33  ;;  %v2890_v44 = vadd.f32 %v6582_v23, %v2627_v35 }
 0x1a3   :  { %3272 = vst.msk [vmem:[%s7000_s4 + $0x2f0] sm:$0xff] %vm3177_vm4, %v3015_v38  ;;  %3400 = vst.msk [vmem:[%s7000_s4 + $0x6f0] sm:$0xff] %vm3177_vm4, %v3143_v39  ;;  %v2761_v28 = vadd.f32 %v6582_v23, %v2498_v40  ;;  %v2889_v45 = vadd.f32 %v6582_v23, %v2626_v41  ;;  %v4114_v47 = vpop.f32.mrb[98].mxu0  ;;  %v4306_v48 = vpop.f32.mrb[98].mxu1 }
 0x1a4   :  { %v3018_v34 = vmax.f32 %v2762_v43, 0.0  ;;  %v3146_v49 = vmax.f32 %v2890_v44, 0.0  ;;  %v2501_v50 = vmul.f32 %v6565_v15, %v4114_v47  ;;  %v2629_v51 = vmul.f32 %v6565_v15, %v4306_v48  ;;  %v1606_v52 = vpop.f32.mrb[99].mxu0  ;;  %v2246_v53 = vpop.f32.mrb[99].mxu1 }
 0x1a5   :  { %v3017_v54 = vmax.f32 %v2761_v28, 0.0  ;;  %v3145_v55 = vmax.f32 %v2889_v45, 0.0  ;;  %v2500_v56 = vmul.f32 %v6565_v15, %v1606_v52  ;;  %v2628_v57 = vmul.f32 %v6565_v15, %v2246_v53 }
 0x1a6   :  { %3275 = vst.msk [vmem:[%s7000_s4 + $0x308] sm:$0xff] %vm3177_vm4, %v3018_v34  ;;  %3403 = vst.msk [vmem:[%s7000_s4 + $0x708] sm:$0xff] %vm3177_vm4, %v3146_v49  ;;  %v2764_v58 = vadd.f32 %v6582_v23, %v2501_v50  ;;  %v2892_v59 = vadd.f32 %v6582_v23, %v2629_v51 }
 0x1a7   :  { %3274 = vst.msk [vmem:[%s7000_s4 + $0x300] sm:$0xff] %vm3177_vm4, %v3017_v54  ;;  %3402 = vst.msk [vmem:[%s7000_s4 + $0x700] sm:$0xff] %vm3177_vm4, %v3145_v55  ;;  %v2763_v60 = vadd.f32 %v6582_v23, %v2500_v56  ;;  %v2891_v61 = vadd.f32 %v6582_v23, %v2628_v57  ;;  %v4117_v62 = vpop.f32.mrb[100].mxu0  ;;  %v4309_v63 = vpop.f32.mrb[100].mxu1 }
 0x1a8   :  { %v3020_v0 = vmax.f32 %v2764_v58, 0.0  ;;  %v3148_v1 = vmax.f32 %v2892_v59, 0.0  ;;  %v2503_v2 = vmul.f32 %v6565_v15, %v4117_v62  ;;  %v2631_v3 = vmul.f32 %v6565_v15, %v4309_v63  ;;  %v1616_v4 = vpop.f32.mrb[101].mxu0  ;;  %v2256_v5 = vpop.f32.mrb[101].mxu1 }
 0x1a9   :  { %v3019_v6 = vmax.f32 %v2763_v60, 0.0  ;;  %v3147_v7 = vmax.f32 %v2891_v61, 0.0  ;;  %v2502_v8 = vmul.f32 %v6565_v15, %v1616_v4  ;;  %v2630_v9 = vmul.f32 %v6565_v15, %v2256_v5 }
 0x1aa   :  { %3277 = vst.msk [vmem:[%s7000_s4 + $0x318] sm:$0xff] %vm3177_vm4, %v3020_v0  ;;  %3405 = vst.msk [vmem:[%s7000_s4 + $0x718] sm:$0xff] %vm3177_vm4, %v3148_v1  ;;  %v2766_v42 = vadd.f32 %v6582_v23, %v2503_v2  ;;  %v2894_v10 = vadd.f32 %v6582_v23, %v2631_v3 }
 0x1ab   :  { %3276 = vst.msk [vmem:[%s7000_s4 + $0x310] sm:$0xff] %vm3177_vm4, %v3019_v6  ;;  %3404 = vst.msk [vmem:[%s7000_s4 + $0x710] sm:$0xff] %vm3177_vm4, %v3147_v7  ;;  %v2765_v11 = vadd.f32 %v6582_v23, %v2502_v8  ;;  %v2893_v12 = vadd.f32 %v6582_v23, %v2630_v9  ;;  %v4120_v13 = vpop.f32.mrb[102].mxu0  ;;  %v4312_v14 = vpop.f32.mrb[102].mxu1 }
 0x1ac   :  { %v3022_v16 = vmax.f32 %v2766_v42, 0.0  ;;  %v3150_v17 = vmax.f32 %v2894_v10, 0.0  ;;  %v2505_v18 = vmul.f32 %v6565_v15, %v4120_v13  ;;  %v2633_v19 = vmul.f32 %v6565_v15, %v4312_v14  ;;  %v1626_v20 = vpop.f32.mrb[103].mxu0  ;;  %v2266_v21 = vpop.f32.mrb[103].mxu1 }
 0x1ad   :  { %v3021_v22 = vmax.f32 %v2765_v11, 0.0  ;;  %v3149_v46 = vmax.f32 %v2893_v12, 0.0  ;;  %v2504_v24 = vmul.f32 %v6565_v15, %v1626_v20  ;;  %v2632_v25 = vmul.f32 %v6565_v15, %v2266_v21 }
 0x1ae   :  { %3279 = vst.msk [vmem:[%s7000_s4 + $0x328] sm:$0xff] %vm3177_vm4, %v3022_v16  ;;  %3407 = vst.msk [vmem:[%s7000_s4 + $0x728] sm:$0xff] %vm3177_vm4, %v3150_v17  ;;  %v2768_v26 = vadd.f32 %v6582_v23, %v2505_v18  ;;  %v2896_v27 = vadd.f32 %v6582_v23, %v2633_v19 }
 0x1af   :  { %3278 = vst.msk [vmem:[%s7000_s4 + $0x320] sm:$0xff] %vm3177_vm4, %v3021_v22  ;;  %3406 = vst.msk [vmem:[%s7000_s4 + $0x720] sm:$0xff] %vm3177_vm4, %v3149_v46  ;;  %v2767_v29 = vadd.f32 %v6582_v23, %v2504_v24  ;;  %v2895_v30 = vadd.f32 %v6582_v23, %v2632_v25  ;;  %v4123_v31 = vpop.f32.mrb[104].mxu0  ;;  %v4315_v32 = vpop.f32.mrb[104].mxu1 }
 0x1b0   :  { %v3024_v33 = vmax.f32 %v2768_v26, 0.0  ;;  %v3152_v35 = vmax.f32 %v2896_v27, 0.0  ;;  %v2507_v36 = vmul.f32 %v6565_v15, %v4123_v31  ;;  %v2635_v37 = vmul.f32 %v6565_v15, %v4315_v32  ;;  %v1636_v38 = vpop.f32.mrb[105].mxu0  ;;  %v2276_v39 = vpop.f32.mrb[105].mxu1 }
 0x1b1   :  { %v3023_v40 = vmax.f32 %v2767_v29, 0.0  ;;  %v3151_v41 = vmax.f32 %v2895_v30, 0.0  ;;  %v2506_v43 = vmul.f32 %v6565_v15, %v1636_v38  ;;  %v2634_v44 = vmul.f32 %v6565_v15, %v2276_v39 }
 0x1b2   :  { %3281 = vst.msk [vmem:[%s7000_s4 + $0x338] sm:$0xff] %vm3177_vm4, %v3024_v33  ;;  %3409 = vst.msk [vmem:[%s7000_s4 + $0x738] sm:$0xff] %vm3177_vm4, %v3152_v35  ;;  %v2770_v28 = vadd.f32 %v6582_v23, %v2507_v36  ;;  %v2898_v45 = vadd.f32 %v6582_v23, %v2635_v37 }
 0x1b3   :  { %3280 = vst.msk [vmem:[%s7000_s4 + $0x330] sm:$0xff] %vm3177_vm4, %v3023_v40  ;;  %3408 = vst.msk [vmem:[%s7000_s4 + $0x730] sm:$0xff] %vm3177_vm4, %v3151_v41  ;;  %v2769_v47 = vadd.f32 %v6582_v23, %v2506_v43  ;;  %v2897_v48 = vadd.f32 %v6582_v23, %v2634_v44  ;;  %v4126_v34 = vpop.f32.mrb[106].mxu0  ;;  %v4318_v49 = vpop.f32.mrb[106].mxu1 }
 0x1b4   :  { %v3026_v50 = vmax.f32 %v2770_v28, 0.0  ;;  %v3154_v51 = vmax.f32 %v2898_v45, 0.0  ;;  %v2509_v52 = vmul.f32 %v6565_v15, %v4126_v34  ;;  %v2637_v53 = vmul.f32 %v6565_v15, %v4318_v49  ;;  %v1646_v54 = vpop.f32.mrb[107].mxu0  ;;  %v2286_v55 = vpop.f32.mrb[107].mxu1 }
 0x1b5   :  { %v3025_v56 = vmax.f32 %v2769_v47, 0.0  ;;  %v3153_v57 = vmax.f32 %v2897_v48, 0.0  ;;  %v2508_v58 = vmul.f32 %v6565_v15, %v1646_v54  ;;  %v2636_v59 = vmul.f32 %v6565_v15, %v2286_v55 }
 0x1b6   :  { %3283 = vst.msk [vmem:[%s7000_s4 + $0x348] sm:$0xff] %vm3177_vm4, %v3026_v50  ;;  %3411 = vst.msk [vmem:[%s7000_s4 + $0x748] sm:$0xff] %vm3177_vm4, %v3154_v51  ;;  %v2772_v60 = vadd.f32 %v6582_v23, %v2509_v52  ;;  %v2900_v61 = vadd.f32 %v6582_v23, %v2637_v53 }
 0x1b7   :  { %3282 = vst.msk [vmem:[%s7000_s4 + $0x340] sm:$0xff] %vm3177_vm4, %v3025_v56  ;;  %3410 = vst.msk [vmem:[%s7000_s4 + $0x740] sm:$0xff] %vm3177_vm4, %v3153_v57  ;;  %v2771_v62 = vadd.f32 %v6582_v23, %v2508_v58  ;;  %v2899_v63 = vadd.f32 %v6582_v23, %v2636_v59  ;;  %v4129_v0 = vpop.f32.mrb[108].mxu0  ;;  %v4321_v1 = vpop.f32.mrb[108].mxu1 }
 0x1b8   :  { %v3028_v2 = vmax.f32 %v2772_v60, 0.0  ;;  %v3156_v3 = vmax.f32 %v2900_v61, 0.0  ;;  %v2511_v4 = vmul.f32 %v6565_v15, %v4129_v0  ;;  %v2639_v5 = vmul.f32 %v6565_v15, %v4321_v1  ;;  %v1656_v6 = vpop.f32.mrb[109].mxu0  ;;  %v2296_v7 = vpop.f32.mrb[109].mxu1 }
 0x1b9   :  { %v3027_v8 = vmax.f32 %v2771_v62, 0.0  ;;  %v3155_v9 = vmax.f32 %v2899_v63, 0.0  ;;  %v2510_v42 = vmul.f32 %v6565_v15, %v1656_v6  ;;  %v2638_v10 = vmul.f32 %v6565_v15, %v2296_v7 }
 0x1ba   :  { %3285 = vst.msk [vmem:[%s7000_s4 + $0x358] sm:$0xff] %vm3177_vm4, %v3028_v2  ;;  %3413 = vst.msk [vmem:[%s7000_s4 + $0x758] sm:$0xff] %vm3177_vm4, %v3156_v3  ;;  %v2774_v11 = vadd.f32 %v6582_v23, %v2511_v4  ;;  %v2902_v12 = vadd.f32 %v6582_v23, %v2639_v5 }
 0x1bb   :  { %3284 = vst.msk [vmem:[%s7000_s4 + $0x350] sm:$0xff] %vm3177_vm4, %v3027_v8  ;;  %3412 = vst.msk [vmem:[%s7000_s4 + $0x750] sm:$0xff] %vm3177_vm4, %v3155_v9  ;;  %v2773_v13 = vadd.f32 %v6582_v23, %v2510_v42  ;;  %v2901_v14 = vadd.f32 %v6582_v23, %v2638_v10  ;;  %v4132_v16 = vpop.f32.mrb[110].mxu0  ;;  %v4324_v17 = vpop.f32.mrb[110].mxu1 }
 0x1bc   :  { %v3030_v18 = vmax.f32 %v2774_v11, 0.0  ;;  %v3158_v19 = vmax.f32 %v2902_v12, 0.0  ;;  %v2513_v20 = vmul.f32 %v6565_v15, %v4132_v16  ;;  %v2641_v21 = vmul.f32 %v6565_v15, %v4324_v17  ;;  %v1666_v22 = vpop.f32.mrb[111].mxu0  ;;  %v2306_v46 = vpop.f32.mrb[111].mxu1 }
 0x1bd   :  { %v3029_v24 = vmax.f32 %v2773_v13, 0.0  ;;  %v3157_v25 = vmax.f32 %v2901_v14, 0.0  ;;  %v2512_v26 = vmul.f32 %v6565_v15, %v1666_v22  ;;  %v2640_v27 = vmul.f32 %v6565_v15, %v2306_v46 }
 0x1be   :  { %3287 = vst.msk [vmem:[%s7000_s4 + $0x368] sm:$0xff] %vm3177_vm4, %v3030_v18  ;;  %3415 = vst.msk [vmem:[%s7000_s4 + $0x768] sm:$0xff] %vm3177_vm4, %v3158_v19  ;;  %v2776_v29 = vadd.f32 %v6582_v23, %v2513_v20  ;;  %v2904_v30 = vadd.f32 %v6582_v23, %v2641_v21 }
 0x1bf   :  { %3286 = vst.msk [vmem:[%s7000_s4 + $0x360] sm:$0xff] %vm3177_vm4, %v3029_v24  ;;  %3414 = vst.msk [vmem:[%s7000_s4 + $0x760] sm:$0xff] %vm3177_vm4, %v3157_v25  ;;  %v2775_v31 = vadd.f32 %v6582_v23, %v2512_v26  ;;  %v2903_v32 = vadd.f32 %v6582_v23, %v2640_v27  ;;  %v4135_v33 = vpop.f32.mrb[112].mxu0  ;;  %v4327_v35 = vpop.f32.mrb[112].mxu1 }
 0x1c0   :  { %v3032_v36 = vmax.f32 %v2776_v29, 0.0  ;;  %v3160_v37 = vmax.f32 %v2904_v30, 0.0  ;;  %v2515_v38 = vmul.f32 %v6565_v15, %v4135_v33  ;;  %v2643_v39 = vmul.f32 %v6565_v15, %v4327_v35  ;;  %v1676_v40 = vpop.f32.mrb[113].mxu0  ;;  %v2316_v41 = vpop.f32.mrb[113].mxu1 }
 0x1c1   :  { %v3031_v43 = vmax.f32 %v2775_v31, 0.0  ;;  %v3159_v44 = vmax.f32 %v2903_v32, 0.0  ;;  %v2514_v28 = vmul.f32 %v6565_v15, %v1676_v40  ;;  %v2642_v45 = vmul.f32 %v6565_v15, %v2316_v41 }
 0x1c2   :  { %3289 = vst.msk [vmem:[%s7000_s4 + $0x378] sm:$0xff] %vm3177_vm4, %v3032_v36  ;;  %3417 = vst.msk [vmem:[%s7000_s4 + $0x778] sm:$0xff] %vm3177_vm4, %v3160_v37  ;;  %v2778_v47 = vadd.f32 %v6582_v23, %v2515_v38  ;;  %v2906_v48 = vadd.f32 %v6582_v23, %v2643_v39 }
 0x1c3   :  { %3288 = vst.msk [vmem:[%s7000_s4 + $0x370] sm:$0xff] %vm3177_vm4, %v3031_v43  ;;  %3416 = vst.msk [vmem:[%s7000_s4 + $0x770] sm:$0xff] %vm3177_vm4, %v3159_v44  ;;  %v2777_v34 = vadd.f32 %v6582_v23, %v2514_v28  ;;  %v2905_v49 = vadd.f32 %v6582_v23, %v2642_v45  ;;  %v4138_v50 = vpop.f32.mrb[114].mxu0  ;;  %v4330_v51 = vpop.f32.mrb[114].mxu1 }
 0x1c4   :  { %v3034_v52 = vmax.f32 %v2778_v47, 0.0  ;;  %v3162_v53 = vmax.f32 %v2906_v48, 0.0  ;;  %v2517_v54 = vmul.f32 %v6565_v15, %v4138_v50  ;;  %v2645_v55 = vmul.f32 %v6565_v15, %v4330_v51  ;;  %v1686_v56 = vpop.f32.mrb[115].mxu0  ;;  %v2326_v57 = vpop.f32.mrb[115].mxu1 }
 0x1c5   :  { %v3033_v58 = vmax.f32 %v2777_v34, 0.0  ;;  %v3161_v59 = vmax.f32 %v2905_v49, 0.0  ;;  %v2516_v60 = vmul.f32 %v6565_v15, %v1686_v56  ;;  %v2644_v61 = vmul.f32 %v6565_v15, %v2326_v57 }
 0x1c6   :  { %3291 = vst.msk [vmem:[%s7000_s4 + $0x388] sm:$0xff] %vm3177_vm4, %v3034_v52  ;;  %3419 = vst.msk [vmem:[%s7000_s4 + $0x788] sm:$0xff] %vm3177_vm4, %v3162_v53  ;;  %v2780_v62 = vadd.f32 %v6582_v23, %v2517_v54  ;;  %v2908_v63 = vadd.f32 %v6582_v23, %v2645_v55 }
 0x1c7   :  { %3290 = vst.msk [vmem:[%s7000_s4 + $0x380] sm:$0xff] %vm3177_vm4, %v3033_v58  ;;  %3418 = vst.msk [vmem:[%s7000_s4 + $0x780] sm:$0xff] %vm3177_vm4, %v3161_v59  ;;  %v2779_v0 = vadd.f32 %v6582_v23, %v2516_v60  ;;  %v2907_v1 = vadd.f32 %v6582_v23, %v2644_v61  ;;  %v4141_v2 = vpop.f32.mrb[116].mxu0  ;;  %v4333_v3 = vpop.f32.mrb[116].mxu1 }
 0x1c8   :  { %v3036_v4 = vmax.f32 %v2780_v62, 0.0  ;;  %v3164_v5 = vmax.f32 %v2908_v63, 0.0  ;;  %v2519_v6 = vmul.f32 %v6565_v15, %v4141_v2  ;;  %v2647_v7 = vmul.f32 %v6565_v15, %v4333_v3  ;;  %v1696_v8 = vpop.f32.mrb[117].mxu0  ;;  %v2336_v9 = vpop.f32.mrb[117].mxu1 }
 0x1c9   :  { %v3035_v42 = vmax.f32 %v2779_v0, 0.0  ;;  %v3163_v10 = vmax.f32 %v2907_v1, 0.0  ;;  %v2518_v11 = vmul.f32 %v6565_v15, %v1696_v8  ;;  %v2646_v12 = vmul.f32 %v6565_v15, %v2336_v9 }
 0x1ca   :  { %3293 = vst.msk [vmem:[%s7000_s4 + $0x398] sm:$0xff] %vm3177_vm4, %v3036_v4  ;;  %3421 = vst.msk [vmem:[%s7000_s4 + $0x798] sm:$0xff] %vm3177_vm4, %v3164_v5  ;;  %v2782_v13 = vadd.f32 %v6582_v23, %v2519_v6  ;;  %v2910_v14 = vadd.f32 %v6582_v23, %v2647_v7 }
 0x1cb   :  { %3292 = vst.msk [vmem:[%s7000_s4 + $0x390] sm:$0xff] %vm3177_vm4, %v3035_v42  ;;  %3420 = vst.msk [vmem:[%s7000_s4 + $0x790] sm:$0xff] %vm3177_vm4, %v3163_v10  ;;  %v2781_v16 = vadd.f32 %v6582_v23, %v2518_v11  ;;  %v2909_v17 = vadd.f32 %v6582_v23, %v2646_v12  ;;  %v4144_v18 = vpop.f32.mrb[118].mxu0  ;;  %v4336_v19 = vpop.f32.mrb[118].mxu1 }
 0x1cc   :  { %v3038_v20 = vmax.f32 %v2782_v13, 0.0  ;;  %v3166_v21 = vmax.f32 %v2910_v14, 0.0  ;;  %v2521_v22 = vmul.f32 %v6565_v15, %v4144_v18  ;;  %v2649_v46 = vmul.f32 %v6565_v15, %v4336_v19  ;;  %v1706_v24 = vpop.f32.mrb[119].mxu0  ;;  %v2346_v25 = vpop.f32.mrb[119].mxu1 }
 0x1cd   :  { %v3037_v26 = vmax.f32 %v2781_v16, 0.0  ;;  %v3165_v27 = vmax.f32 %v2909_v17, 0.0  ;;  %v2520_v29 = vmul.f32 %v6565_v15, %v1706_v24  ;;  %v2648_v30 = vmul.f32 %v6565_v15, %v2346_v25 }
 0x1ce   :  { %3295 = vst.msk [vmem:[%s7000_s4 + $0x3a8] sm:$0xff] %vm3177_vm4, %v3038_v20  ;;  %3423 = vst.msk [vmem:[%s7000_s4 + $0x7a8] sm:$0xff] %vm3177_vm4, %v3166_v21  ;;  %v2784_v31 = vadd.f32 %v6582_v23, %v2521_v22  ;;  %v2912_v32 = vadd.f32 %v6582_v23, %v2649_v46 }
 0x1cf   :  { %3294 = vst.msk [vmem:[%s7000_s4 + $0x3a0] sm:$0xff] %vm3177_vm4, %v3037_v26  ;;  %3422 = vst.msk [vmem:[%s7000_s4 + $0x7a0] sm:$0xff] %vm3177_vm4, %v3165_v27  ;;  %v2783_v33 = vadd.f32 %v6582_v23, %v2520_v29  ;;  %v2911_v35 = vadd.f32 %v6582_v23, %v2648_v30  ;;  %v4147_v36 = vpop.f32.mrb[120].mxu0  ;;  %v4339_v37 = vpop.f32.mrb[120].mxu1 }
 0x1d0   :  { %v3040_v38 = vmax.f32 %v2784_v31, 0.0  ;;  %v3168_v39 = vmax.f32 %v2912_v32, 0.0  ;;  %v2523_v40 = vmul.f32 %v6565_v15, %v4147_v36  ;;  %v2651_v41 = vmul.f32 %v6565_v15, %v4339_v37  ;;  %v1716_v43 = vpop.f32.mrb[121].mxu0  ;;  %v2356_v44 = vpop.f32.mrb[121].mxu1 }
 0x1d1   :  { %v3039_v28 = vmax.f32 %v2783_v33, 0.0  ;;  %v3167_v45 = vmax.f32 %v2911_v35, 0.0  ;;  %v2522_v47 = vmul.f32 %v6565_v15, %v1716_v43  ;;  %v2650_v48 = vmul.f32 %v6565_v15, %v2356_v44 }
 0x1d2   :  { %3297 = vst.msk [vmem:[%s7000_s4 + $0x3b8] sm:$0xff] %vm3177_vm4, %v3040_v38  ;;  %3425 = vst.msk [vmem:[%s7000_s4 + $0x7b8] sm:$0xff] %vm3177_vm4, %v3168_v39  ;;  %v2786_v34 = vadd.f32 %v6582_v23, %v2523_v40  ;;  %v2914_v49 = vadd.f32 %v6582_v23, %v2651_v41 }
 0x1d3   :  { %3296 = vst.msk [vmem:[%s7000_s4 + $0x3b0] sm:$0xff] %vm3177_vm4, %v3039_v28  ;;  %3424 = vst.msk [vmem:[%s7000_s4 + $0x7b0] sm:$0xff] %vm3177_vm4, %v3167_v45  ;;  %v2785_v50 = vadd.f32 %v6582_v23, %v2522_v47  ;;  %v2913_v51 = vadd.f32 %v6582_v23, %v2650_v48  ;;  %v4150_v52 = vpop.f32.mrb[122].mxu0  ;;  %v4342_v53 = vpop.f32.mrb[122].mxu1 }
 0x1d4   :  { %v3042_v54 = vmax.f32 %v2786_v34, 0.0  ;;  %v3170_v55 = vmax.f32 %v2914_v49, 0.0  ;;  %v2525_v56 = vmul.f32 %v6565_v15, %v4150_v52  ;;  %v2653_v57 = vmul.f32 %v6565_v15, %v4342_v53  ;;  %v1726_v58 = vpop.f32.mrb[123].mxu0  ;;  %v2366_v59 = vpop.f32.mrb[123].mxu1 }
 0x1d5   :  { %v3041_v60 = vmax.f32 %v2785_v50, 0.0  ;;  %v3169_v61 = vmax.f32 %v2913_v51, 0.0  ;;  %v2524_v62 = vmul.f32 %v6565_v15, %v1726_v58  ;;  %v2652_v63 = vmul.f32 %v6565_v15, %v2366_v59 }
 0x1d6   :  { %3299 = vst.msk [vmem:[%s7000_s4 + $0x3c8] sm:$0xff] %vm3177_vm4, %v3042_v54  ;;  %3427 = vst.msk [vmem:[%s7000_s4 + $0x7c8] sm:$0xff] %vm3177_vm4, %v3170_v55  ;;  %v2788_v0 = vadd.f32 %v6582_v23, %v2525_v56  ;;  %v2916_v1 = vadd.f32 %v6582_v23, %v2653_v57 }
 0x1d7   :  { %3298 = vst.msk [vmem:[%s7000_s4 + $0x3c0] sm:$0xff] %vm3177_vm4, %v3041_v60  ;;  %3426 = vst.msk [vmem:[%s7000_s4 + $0x7c0] sm:$0xff] %vm3177_vm4, %v3169_v61  ;;  %v2787_v2 = vadd.f32 %v6582_v23, %v2524_v62  ;;  %v2915_v3 = vadd.f32 %v6582_v23, %v2652_v63  ;;  %v4153_v4 = vpop.f32.mrb[124].mxu0  ;;  %v4345_v5 = vpop.f32.mrb[124].mxu1 }
 0x1d8   :  { %v3044_v6 = vmax.f32 %v2788_v0, 0.0  ;;  %v3172_v7 = vmax.f32 %v2916_v1, 0.0  ;;  %v2527_v8 = vmul.f32 %v6565_v15, %v4153_v4  ;;  %v2655_v9 = vmul.f32 %v6565_v15, %v4345_v5  ;;  %v1736_v42 = vpop.f32.mrb[125].mxu0  ;;  %v2376_v10 = vpop.f32.mrb[125].mxu1 }
 0x1d9   :  { %v3043_v11 = vmax.f32 %v2787_v2, 0.0  ;;  %v3171_v12 = vmax.f32 %v2915_v3, 0.0  ;;  %v2526_v13 = vmul.f32 %v6565_v15, %v1736_v42  ;;  %v2654_v14 = vmul.f32 %v6565_v15, %v2376_v10 }
 0x1da   :  { %3301 = vst.msk [vmem:[%s7000_s4 + $0x3d8] sm:$0xff] %vm3177_vm4, %v3044_v6  ;;  %3429 = vst.msk [vmem:[%s7000_s4 + $0x7d8] sm:$0xff] %vm3177_vm4, %v3172_v7  ;;  %v2790_v16 = vadd.f32 %v6582_v23, %v2527_v8  ;;  %v2918_v17 = vadd.f32 %v6582_v23, %v2655_v9 }
 0x1db   :  { %3300 = vst.msk [vmem:[%s7000_s4 + $0x3d0] sm:$0xff] %vm3177_vm4, %v3043_v11  ;;  %3428 = vst.msk [vmem:[%s7000_s4 + $0x7d0] sm:$0xff] %vm3177_vm4, %v3171_v12  ;;  %v2789_v18 = vadd.f32 %v6582_v23, %v2526_v13  ;;  %v2917_v19 = vadd.f32 %v6582_v23, %v2654_v14  ;;  %v4156_v20 = vpop.f32.mrb[126].mxu0  ;;  %v4348_v21 = vpop.f32.mrb[126].mxu1 }
 0x1dc   :  { %v3046_v22 = vmax.f32 %v2790_v16, 0.0  ;;  %v3174_v46 = vmax.f32 %v2918_v17, 0.0  ;;  %v2529_v24 = vmul.f32 %v6565_v15, %v4156_v20  ;;  %v2657_v25 = vmul.f32 %v6565_v15, %v4348_v21  ;;  %v1746_v26 = vpop.f32.mrb[127].mxu0  ;;  %v2386_v27 = vpop.f32.mrb[127].mxu1 }
 0x1dd   :  { %v3045_v29 = vmax.f32 %v2789_v18, 0.0  ;;  %v3173_v30 = vmax.f32 %v2917_v19, 0.0  ;;  %v2528_v31 = vmul.f32 %v6565_v15, %v1746_v26  ;;  %v2656_v32 = vmul.f32 %v6565_v15, %v2386_v27 }
 0x1de   :  { %3303 = vst.msk [vmem:[%s7000_s4 + $0x3e8] sm:$0xff] %vm3177_vm4, %v3046_v22  ;;  %3431 = vst.msk [vmem:[%s7000_s4 + $0x7e8] sm:$0xff] %vm3177_vm4, %v3174_v46  ;;  %v2792_v33 = vadd.f32 %v6582_v23, %v2529_v24  ;;  %v2920_v35 = vadd.f32 %v6582_v23, %v2657_v25 }
 0x1df   :  { %3302 = vst.msk [vmem:[%s7000_s4 + $0x3e0] sm:$0xff] %vm3177_vm4, %v3045_v29  ;;  %3430 = vst.msk [vmem:[%s7000_s4 + $0x7e0] sm:$0xff] %vm3177_vm4, %v3173_v30  ;;  %v2791_v15 = vadd.f32 %v6582_v23, %v2528_v31  ;;  %v2919_v36 = vadd.f32 %v6582_v23, %v2656_v32 }
 0x1e0   :  { %v3048_v37 = vmax.f32 %v2792_v33, 0.0  ;;  %v3176_v38 = vmax.f32 %v2920_v35, 0.0 }
 0x1e1   :  { %v3047_v39 = vmax.f32 %v2791_v15, 0.0  ;;  %v3175_v40 = vmax.f32 %v2919_v36, 0.0 }
 0x1e2   :  { %3305 = vst.msk [vmem:[%s7000_s4 + $0x3f8] sm:$0xff] %vm3177_vm4, %v3048_v37  ;;  %3433 = vst.msk [vmem:[%s7000_s4 + $0x7f8] sm:$0xff] %vm3177_vm4, %v3176_v38 }
 0x1e3   :  { %3304 = vst.msk [vmem:[%s7000_s4 + $0x3f0] sm:$0xff] %vm3177_vm4, %v3047_v39  ;;  %3432 = vst.msk [vmem:[%s7000_s4 + $0x7f0] sm:$0xff] %vm3177_vm4, %v3175_v40 }

</bundles_post_ra>
